<compile_context>
chip_gen: v6e
topology: v6e:2x2x1
jax: 0.10.0
libtpu: 0.0.40
codegen_flags: <defaults>
</compile_context>

<pallas_src>
import functools

import jax
import jax.numpy as jnp
import numpy as np
from jax.experimental import pallas as pl
from jax.experimental.pallas import tpu as pltpu


# ----------------------------------------------------------------------------
# CharTextTransform stand-in (deterministic, built in-script)
# ----------------------------------------------------------------------------
_CHARS = ["<blank>", "|", "'"] + [chr(c) for c in range(ord("a"), ord("z") + 1)]
CHAR_MAP = {c: i for i, c in enumerate(_CHARS)}   # char -> index
INDEX_MAP = {i: c for c, i in CHAR_MAP.items()}   # index -> char
BLANK_ID = CHAR_MAP["<blank>"]                    # == 0
VOCAB = len(_CHARS)                               # 29


def _round_up(x: int, m: int) -> int:
    return ((x + m - 1) // m) * m


# ----------------------------------------------------------------------------
# Pallas kernel: per-timestep argmax over the vocab (lane) axis,
# stored lane-dense as (tile_t//128, 128).
# ----------------------------------------------------------------------------
def _greedy_ctc_kernel(em_ref, idx_ref):
    e = em_ref[0]                                              # (tile_t, C)
    tile_t, c = e.shape
    rows = tile_t // 128

    col = jax.lax.broadcasted_iota(jnp.int32, (tile_t, c), 1)  # lane indices

    if e.dtype == jnp.bfloat16:
        # bf16 -> f32 widen is exact and leaves the low 16 bits of the bit
        # pattern zero, so after the order-fix the low 16 key bits are free
        # to carry the (reversed) column: one cross-lane max yields both the
        # max value and the first-occurrence argmax.
        bits = pltpu.bitcast(e.astype(jnp.float32), jnp.int32)
        key = jnp.where(bits >= 0, bits, bits ^ jnp.int32(0x7FFF0000))
        packed = key | (jnp.int32(c - 1) - col)                # ties -> lowest col
        best = jnp.max(packed, axis=-1, keepdims=True)         # (tile_t, 1), 1 XLU reduce
        best = best.reshape(rows, 128)                         # sublane->lane relayout (XLU)
        idx = jnp.int32(c - 1) - (best & jnp.int32(0xFFFF))    # always in [0, c-1]
    else:
        # Generic float fallback: order-preserving integer keys (no NaN
        # poisoning), two cross-lane reductions.
        bits = pltpu.bitcast(e.astype(jnp.float32), jnp.int32)
        key = jnp.where(bits >= 0, bits, bits ^ jnp.int32(0x7FFFFFFF))
        kmax = jnp.max(key, axis=-1, keepdims=True)
        idx = jnp.min(jnp.where(key == kmax, col, jnp.int32(c)),
                      axis=-1, keepdims=True)
        idx = jnp.minimum(idx, jnp.int32(c - 1)).reshape(rows, 128)

    idx_ref[0] = idx


@functools.partial(jax.jit, static_argnames=("tile_t",))
def greedy_ctc_argmax(emission: jax.Array, *, tile_t: int = 8192) -> jax.Array:
    """emission: (B, T, C) float (bf16 or f32). Returns (B, T) int32 argmax."""
    b, t, c = emission.shape

    # Tile over time in multiples of 128 (lane-dense output rows); cover each
    # utterance in as few blocks as possible.  No input padding: the grid uses
    # cdiv and Pallas clips the ragged last block (garbage rows are discarded
    # by the [:, :t] slice below).
    tile_t = max(128, (int(tile_t) // 128) * 128)
    tile_t = min(tile_t, _round_up(t, 128))
    grid_t = pl.cdiv(t, tile_t)
    rows_per_tile = tile_t // 128
    out_rows = grid_t * rows_per_tile          # fresh output buffer; padding is free

    idx = pl.pallas_call(
        _greedy_ctc_kernel,
        out_shape=jax.ShapeDtypeStruct((b, out_rows, 128), jnp.int32),
        grid_spec=pltpu.PrefetchScalarGridSpec(
            num_scalar_prefetch=0,
            grid=(b, grid_t),                  # both axes independent
            in_specs=[pl.BlockSpec((1, tile_t, c), lambda bi, ti: (bi, ti, 0))],
            out_specs=pl.BlockSpec((1, rows_per_tile, 128),
                                   lambda bi, ti: (bi, ti, 0)),
        ),
        compiler_params=pltpu.CompilerParams(
            # No cross-block state -> both axes parallel (feeds both v7x TCs;
            # neutral on single-TC v5e/v6e).
            dimension_semantics=("parallel", "parallel"),
        ),
    )(emission)

    return idx.reshape(b, out_rows * 128)[:, :t]               # (B, T) int32


# ----------------------------------------------------------------------------
# Host-side post-processing: dedupe consecutive, drop blanks, map to string.
# (XLA scatter-based compaction was removed: the (B, T) int32 argmax already
# crosses to host for string mapping, and host dedupe is trivial.)
# ----------------------------------------------------------------------------
def _indices_to_transcript(seq) -> str:
    out = []
    prev = None
    for i in seq:
        i = int(i)
        if i != prev and i != BLANK_ID:
            out.append(INDEX_MAP[i])
        prev = i
    # TODO(synk): the ragged string join/replace/strip has no Pallas equivalent.
    return "".join(out).replace("|", " ").strip()


def greedy_ctc_decode_batch(emission: jax.Array, *, tile_t: int = 8192):
    idx = jax.block_until_ready(greedy_ctc_argmax(emission, tile_t=tile_t))
    return [_indices_to_transcript(row) for row in np.asarray(idx)]


if __name__ == "__main__":
    B, T, C = 2, 512, VOCAB                    # small batch of utterances
    key = jax.random.PRNGKey(0)
    # Producer contract: consume the dtype the acoustic model emits (bf16 here);
    # no standalone f32->bf16 downcast pass is added in front of the kernel.
    emission = jax.random.normal(key, (B, T, C), dtype=jnp.bfloat16)

    # Run the Pallas kernel once and block on the result.
    idx = jax.block_until_ready(greedy_ctc_argmax(emission))   # (B, T) int32

    # Reference with identical semantics on the same inputs.
    ref_idx = np.asarray(jnp.argmax(emission, axis=-1)).astype(np.int32)
    assert np.array_equal(np.asarray(idx), ref_idx), "argmax mismatch vs jnp.argmax"

    transcripts = [_indices_to_transcript(row) for row in np.asarray(idx)]
    ref_transcripts = [_indices_to_transcript(row) for row in ref_idx]
    assert transcripts == ref_transcripts, (transcripts, ref_transcripts)

    print("KERNEL_OK")
</pallas_src>

<mosaic_0001>
module attributes {stable_mosaic.version = 11 : i64} {
  func.func @_greedy_ctc_kernel(%arg0: i32, %arg1: i32, %arg2: memref<1x512x29xbf16, #tpu.memory_space<vmem>>, %arg3: memref<1x4x128xi32, #tpu.memory_space<vmem>>) attributes {dimension_semantics = [#tpu.dimension_semantics<parallel>, #tpu.dimension_semantics<parallel>], iteration_bounds = array<i64: 2, 1>, scalar_prefetch = 0 : i64, scratch_operands = 0 : i64, tpu.core_type = #tpu.core_type<tc>, window_params = [{transform_indices = @transform_0, window_bounds = array<i64: 1, 512, 29>}, {transform_indices = @transform_1, window_bounds = array<i64: 1, 4, 128>}]} {
    %c0 = arith.constant 0 : index
    %c0_0 = arith.constant 0 : index
    %c0_1 = arith.constant 0 : index
    %0 = vector.load %arg2[%c0, %c0_0, %c0_1] : memref<1x512x29xbf16, #tpu.memory_space<vmem>>, vector<1x512x29xbf16>
    %1 = vector.shape_cast %0 : vector<1x512x29xbf16> to vector<512x29xbf16>
    %2 = tpu.iota {dimensions = array<i32: 1>} : vector<512x29xi32>
    %3 = arith.extf %1 : vector<512x29xbf16> to vector<512x29xf32>
    %4 = tpu.bitcast %3 : vector<512x29xf32> -> vector<512x29xi32>
    %c0_i32 = arith.constant 0 : i32
    %5 = vector.broadcast %c0_i32 : i32 to vector<512x29xi32>
    %6 = arith.cmpi sge, %4, %5 : vector<512x29xi32>
    %c2147418112_i32 = arith.constant 2147418112 : i32
    %7 = vector.broadcast %c2147418112_i32 : i32 to vector<512x29xi32>
    %8 = arith.xori %4, %7 : vector<512x29xi32>
    %9 = arith.select %6, %4, %8 : vector<512x29xi1>, vector<512x29xi32>
    %c28_i32 = arith.constant 28 : i32
    %10 = vector.broadcast %c28_i32 : i32 to vector<512x29xi32>
    %11 = arith.subi %10, %2 : vector<512x29xi32>
    %12 = arith.ori %9, %11 : vector<512x29xi32>
    %cst = arith.constant dense<-2147483648> : vector<512xi32>
    %13 = vector.multi_reduction <maxsi>, %12, %cst [1] : vector<512x29xi32> to vector<512xi32>
    %14 = vector.shape_cast %13 : vector<512xi32> to vector<512x1xi32>
    %15 = vector.shape_cast %14 : vector<512x1xi32> to vector<4x128xi32>
    %c65535_i32 = arith.constant 65535 : i32
    %16 = vector.broadcast %c65535_i32 : i32 to vector<4x128xi32>
    %17 = arith.andi %15, %16 : vector<4x128xi32>
    %c28_i32_2 = arith.constant 28 : i32
    %18 = vector.broadcast %c28_i32_2 : i32 to vector<4x128xi32>
    %19 = arith.subi %18, %17 : vector<4x128xi32>
    %c0_3 = arith.constant 0 : index
    %c0_4 = arith.constant 0 : index
    %c0_5 = arith.constant 0 : index
    %20 = vector.load %arg3[%c0_3, %c0_4, %c0_5] : memref<1x4x128xi32, #tpu.memory_space<vmem>>, vector<1x4x128xi32>
    %21 = vector.shape_cast %20 : vector<1x4x128xi32> to vector<4x128xi32>
    %22 = vector.shape_cast %19 : vector<4x128xi32> to vector<1x4x128xi32>
    tpu.vector_store %arg3[%c0_3, %c0_4, %c0_5], %22 {strides = array<i32>} : memref<1x4x128xi32, #tpu.memory_space<vmem>>, vector<1x4x128xi32>,
    return
  }
  func.func @transform_0(%arg0: i32, %arg1: i32) -> (i32, i32, i32) {
    %c0_i32 = arith.constant 0 : i32
    %c0_i32_0 = arith.constant 0 : i32
    return %arg0, %arg1, %c0_i32 : i32, i32, i32
  }
  func.func @transform_1(%arg0: i32, %arg1: i32) -> (i32, i32, i32) {
    %c0_i32 = arith.constant 0 : i32
    %c0_i32_0 = arith.constant 0 : i32
    return %arg0, %arg1, %c0_i32 : i32, i32, i32
  }
}

</mosaic_0001>

<bundles_post_ra>
// kernel: greedy_ctc_argmax.1
= control target key start
LH: loop header
LB: loop body
LE: loop exit
PB: predicated region body
PF: predicated region fallthrough
CT: control target
= control target key end

     0   :  { %s2349_s6 = smov 0   ;;  %s2351_s7 = smov 0   ;;  %s3640_s0 = inlined_call_operand.vmem [shape: bf16[2,512,29], index: 0, kind: input, shape index: {}]   ;;  %s3641_s1 = inlined_call_operand.vmem [shape: s32[2,4,128], index: 1, kind: output, shape index: {}]  }
   0x1   :  { %s2353_s8 = smov 0  }
   0x2 LB: > { %s23_s9 = sadd.s32 1, %s2333_s7  ;;  %p2125_p0 = scmp.ge.s32.totalorder %s2337_s8, 1  ;;  %s2337_s8 = sphi %s2353_s8, %s11_s8   ;;  %s2333_s7 = sphi %s2351_s7, %s3966_s7   ;;  %s2329_s6 = sphi %s2349_s6, %s3965_s6  }
   0x3   : > { %p25_p1 = scmp.ge.s32.totalorder %s23_s9, 2  ;;  %p108_p2 = scmp.lt.s32.totalorder %s2337_s8, 3 }
   0x5   : > { %s3968_s9 = smov (%p25_p1, %s23_s9), 0  ;;  %p109_p3 = pnand %p2125_p0, %p108_p2 }
   0x7   : > { %112 = sbr.rel (%p109_p3) target bundleno = 553 (0x229), region = 24 }
   0xc   : > { %p135_p4 = scmp.lt.s32.totalorder %s2329_s6, 1  ;;  %v3642_v0 = vlaneseq  ;;  %vm602_vm0 = vcmask 236544  }
   0xe   : > { %s3970_s6 = smov (!%p135_p4, %s2329_s6), 1  ;;  %v2371_v1 = vand.u32 127, %v3642_v0 }
   0xf   : > { %s2131_s10 = sshll.u32 %s3970_s6, 8  ;;  %s2128_s14 = sshll.u32 %s3970_s6, 2 }
  0x10   : > { %3752 = vst [vmem:[#allocation2_spill] sm:$0xff] %v2371_v1  ;;  %s2376_s13 = scalar_lea.vmem %s3640_s0, %s2131_s10  ;;  %v2382_v9 = vsub.s32 28, %v2371_v1  ;;  %s150_s17 = scalar_lea.vmem %s3641_s1, %s2128_s14 }
  0x11   : > { %v2133_v2 = vld [vmem:[%s2376_s13] sm:$0xff]   ;;  %v2260_v3 = vld [vmem:[%s2376_s13 + $0x8] sm:$0xff]   ;;  %v2261_v4 = vld [vmem:[%s2376_s13 + $0x10] sm:$0xff]  }
  0x12   : > { %v2135_v5 = vunpack.c.h.bf16 %v2133_v2  ;;  %v2134_v6 = vunpack.c.l.bf16 %v2133_v2  ;;  %v2138_v7 = vunpack.c.l.bf16 %v2260_v3  ;;  %v2139_v8 = vunpack.c.h.bf16 %v2260_v3  ;;  %v2262_v16 = vld [vmem:[%s2376_s13 + $0x18] sm:$0xff]   ;;  %v2263_v42 = vld [vmem:[%s2376_s13 + $0x20] sm:$0xff]   ;;  %v2264_v50 = vld [vmem:[%s2376_s13 + $0x28] sm:$0xff]  }
  0x13   : > { %v2142_v10 = vunpack.c.l.bf16 %v2261_v4  ;;  %v2143_v11 = vunpack.c.h.bf16 %v2261_v4  ;;  %v2146_v27 = vunpack.c.l.bf16 %v2262_v16  ;;  %v2147_v40 = vunpack.c.h.bf16 %v2262_v16  ;;  %v2269_v1 = vld [vmem:[%s2376_s13 + $0x50] sm:$0xff]  }
  0x14   : > { %vm346_vm1 = vcmp.ge.s32.totalorder %v2135_v5, 0  ;;  %v410_v12 = vxor.u32 2147418112, %v2135_v5  ;;  %vm345_vm2 = vcmp.ge.s32.totalorder %v2134_v6, 0  ;;  %v409_v13 = vxor.u32 2147418112, %v2134_v6 }
  0x15   : > { %vm347_vm3 = vcmp.ge.s32.totalorder %v2138_v7, 0  ;;  %v411_v14 = vxor.u32 2147418112, %v2138_v7  ;;  %vm348_vm4 = vcmp.ge.s32.totalorder %v2139_v8, 0  ;;  %v412_v15 = vxor.u32 2147418112, %v2139_v8 }
  0x16   : > { %v474_v17 = vsel %vm346_vm1, %v2135_v5, %v410_v12  ;;  %v473_v18 = vsel %vm345_vm2, %v2134_v6, %v409_v13  ;;  %vm349_vm5 = vcmp.ge.s32.totalorder %v2142_v10, 0  ;;  %v413_v19 = vxor.u32 2147418112, %v2142_v10  ;;  %v2265_v13 = vld [vmem:[%s2376_s13 + $0x30] sm:$0xff]  }
  0x17   : > { %v539_v20 = vor.u32 %v2382_v9, %v474_v17  ;;  %v538_v21 = vor.u32 %v2382_v9, %v473_v18  ;;  %v475_v22 = vsel %vm347_vm3, %v2138_v7, %v411_v14  ;;  %v476_v23 = vsel %vm348_vm4, %v2139_v8, %v412_v15 }
  0x18   : > { %v540_v24 = vor.u32 %v2382_v9, %v475_v22  ;;  %v541_v25 = vor.u32 %v2382_v9, %v476_v23  ;;  %v477_v26 = vsel %vm349_vm5, %v2142_v10, %v413_v19  ;;  %vm350_vm6 = vcmp.ge.s32.totalorder %v2143_v11, 0  ;;  %v2455_v22 = vld [vmem:[%s2376_s13 + $0x80] sm:$0xff]   ;;  %v2266_v23 = vld [vmem:[%s2376_s13 + $0x38] sm:$0xff]  }
  0x19   : > { %v2390_v28 = vsel %vm602_vm0, %v539_v20, 2147483648  ;;  %v2393_v29 = vsel %vm602_vm0, %v538_v21, 2147483648  ;;  %v414_v30 = vxor.u32 2147418112, %v2143_v11  ;;  %v542_v36 = vor.u32 %v2382_v9, %v477_v26 }
  0x1a   : > { %v620_v31 = vshra.s32 %v2390_v28, 16  ;;  %v605_v32 = vshra.s32 %v2393_v29, 16  ;;  %v2398_v33 = vsel %vm602_vm0, %v540_v24, 2147483648  ;;  %v2402_v35 = vsel %vm602_vm0, %v541_v25, 2147483648  ;;  %v2459_v24 = vld [vmem:[%s2376_s13 + $0xc0] sm:$0xff]  }
  0x1b   : > { %v635_v34 = vshra.s32 %v2398_v33, 16  ;;  %v478_v39 = vsel %vm350_vm6, %v2143_v11, %v414_v30  ;;  %vm351_vm7 = vcmp.ge.s32.totalorder %v2146_v27, 0  ;;  %v415_v41 = vxor.u32 2147418112, %v2146_v27 }
  0x1c   : > { %v2405_v37 = vcvt.s32.f32 %v620_v31  ;;  %v2407_v38 = vcvt.s32.f32 %v605_v32  ;;  %v650_v44 = vshra.s32 %v2402_v35, 16  ;;  %v2416_v45 = vsel %vm602_vm0, %v542_v36, 2147483648 }
  0x1d   : > { %v2412_v43 = vcvt.s32.f32 %v635_v34  ;;  %v543_v46 = vor.u32 %v2382_v9, %v478_v39  ;;  %v479_v47 = vsel %vm351_vm7, %v2146_v27, %v415_v41  ;;  %v416_v48 = vxor.u32 2147418112, %v2147_v40 }
  0x1e   : > { %623 = vmax.xlane.f32.xlu1 %v2405_v37  ;;  %608 = vmax.xlane.f32.xlu0 %v2407_v38  ;;  %v2150_v49 = vunpack.c.l.bf16 %v2263_v42  ;;  %vm352_vm8 = vcmp.ge.s32.totalorder %v2147_v40, 0  ;;  %v2421_v51 = vcvt.s32.f32 %v650_v44  ;;  %v665_v52 = vshra.s32 %v2416_v45, 16 }
  0x1f   : > { %v2425_v53 = vsel %vm602_vm0, %v543_v46, 2147483648  ;;  %v544_v54 = vor.u32 %v2382_v9, %v479_v47  ;;  %v2151_v55 = vunpack.c.h.bf16 %v2263_v42  ;;  %v480_v56 = vsel %vm352_vm8, %v2147_v40, %v416_v48  ;;  %v2483_v48 = vld [vmem:[%s2376_s13 + $0x88] sm:$0xff]  }
  0x20   : > { %v417_v57 = vxor.u32 2147418112, %v2150_v49  ;;  %v2154_v58 = vunpack.c.l.bf16 %v2264_v50  ;;  %vm353_vm9 = vcmp.ge.s32.totalorder %v2150_v49, 0  ;;  %v2429_v59 = vcvt.s32.f32 %v665_v52 }
  0x21   : > { %v680_v60 = vshra.s32 %v2425_v53, 16  ;;  %v2433_v61 = vsel %vm602_vm0, %v544_v54, 2147483648  ;;  %v545_v62 = vor.u32 %v2382_v9, %v480_v56  ;;  %v418_v63 = vxor.u32 2147418112, %v2151_v55 }
  0x22   : > { %638 = vmax.xlane.f32.xlu0 %v2412_v43  ;;  %v2155_v2 = vunpack.c.h.bf16 %v2264_v50  ;;  %v481_v3 = vsel %vm353_vm9, %v2150_v49, %v417_v57  ;;  %vm354_vm10 = vcmp.ge.s32.totalorder %v2151_v55, 0  ;;  %v419_v4 = vxor.u32 2147418112, %v2154_v58 }
  0x23   : > { %vm355_vm11 = vcmp.ge.s32.totalorder %v2154_v58, 0  ;;  %v2437_v5 = vcvt.s32.f32 %v680_v60  ;;  %v695_v6 = vshra.s32 %v2433_v61, 16  ;;  %v2441_v7 = vsel %vm602_vm0, %v545_v62, 2147483648 }
  0x24   : > { %v546_v8 = vor.u32 %v2382_v9, %v481_v3  ;;  %v482_v10 = vsel %vm354_vm10, %v2151_v55, %v418_v63  ;;  %v420_v11 = vxor.u32 2147418112, %v2155_v2  ;;  %v483_v12 = vsel %vm355_vm11, %v2154_v58, %v419_v4  ;;  %v2267_v3 = vld [vmem:[%s2376_s13 + $0x40] sm:$0xff]  }
  0x25   : > { %vm356_vm12 = vcmp.ge.s32.totalorder %v2155_v2, 0  ;;  %v2446_v14 = vcvt.s32.f32 %v695_v6  ;;  %v710_v15 = vshra.s32 %v2441_v7, 16  ;;  %v547_v16 = vor.u32 %v2382_v9, %v482_v10 }
  0x26   : > { %653 = vmax.xlane.f32.xlu0 %v2421_v51  ;;  %v2451_v17 = vsel %vm602_vm0, %v546_v8, 2147483648  ;;  %v548_v18 = vor.u32 %v2382_v9, %v483_v12  ;;  %v484_v19 = vsel %vm356_vm12, %v2155_v2, %v420_v11  ;;  %v2158_v20 = vunpack.c.l.bf16 %v2265_v13 }
  0x27   : > { %v2159_v21 = vunpack.c.h.bf16 %v2265_v13  ;;  %v2462_v25 = vcvt.s32.f32 %v710_v15  ;;  %v725_v26 = vshra.s32 %v2451_v17, 16  ;;  %v2466_v27 = vsel %vm602_vm0, %v547_v16, 2147483648  ;;  %v2503_v16 = vld [vmem:[%s2376_s13 + $0x90] sm:$0xff]  }
  0x28   : > { %v549_v30 = vor.u32 %v2382_v9, %v484_v19  ;;  %v2470_v31 = vsel %vm602_vm0, %v548_v18, 2147483648  ;;  %v421_v32 = vxor.u32 2147418112, %v2158_v20  ;;  %v2199_v34 = vunpack.c.h.bf16 %v2455_v22 }
  0x29   : > { %vm357_vm13 = vcmp.ge.s32.totalorder %v2158_v20, 0  ;;  %v422_v36 = vxor.u32 2147418112, %v2159_v21  ;;  %v2162_v39 = vunpack.c.l.bf16 %v2266_v23  ;;  %v2230_v40 = vunpack.c.l.bf16 %v2459_v24 }
  0x2a   : > { %668 = vmax.xlane.f32.xlu0 %v2429_v59  ;;  %v740_v41 = vshra.s32 %v2466_v27, 16  ;;  %vm358_vm14 = vcmp.ge.s32.totalorder %v2159_v21, 0  ;;  %vm378_vm15 = vcmp.ge.s32.totalorder %v2199_v34, 0  ;;  %v442_v42 = vxor.u32 2147418112, %v2199_v34 }
  0x2b   : > { %v2476_v44 = vcvt.s32.f32 %v725_v26  ;;  %v755_v46 = vshra.s32 %v2470_v31, 16  ;;  %v2480_v47 = vsel %vm602_vm0, %v549_v30, 2147483648  ;;  %v485_v49 = vsel %vm357_vm13, %v2158_v20, %v421_v32 }
  0x2c   : > { %v506_v50 = vsel %vm378_vm15, %v2199_v34, %v442_v42  ;;  %vm393_vm1 = vcmp.ge.s32.totalorder %v2230_v40, 0  ;;  %v457_v52 = vxor.u32 2147418112, %v2230_v40  ;;  %v486_v54 = vsel %vm358_vm14, %v2159_v21, %v422_v36 }
  0x2d   : > { %v423_v55 = vxor.u32 2147418112, %v2162_v39  ;;  %v2163_v56 = vunpack.c.h.bf16 %v2266_v23  ;;  %v571_v57 = vor.u32 %v2382_v9, %v506_v50  ;;  %v2486_v58 = vcvt.s32.f32 %v740_v41  ;;  %v2509_v23 = vld [vmem:[%s2376_s13 + $0x58] sm:$0xff]  }
  0x2e   : > { %683 = vmax.xlane.f32.xlu0 %v2437_v5  ;;  %vm359_vm2 = vcmp.ge.s32.totalorder %v2162_v39, 0  ;;  %v521_v60 = vsel %vm393_vm1, %v2230_v40, %v457_v52  ;;  %v2203_v62 = vunpack.c.h.bf16 %v2483_v48  ;;  %v770_v63 = vshra.s32 %v2480_v47, 16 }
  0x2f   : > { %v550_v2 = vor.u32 %v2382_v9, %v485_v49  ;;  %v2494_v4 = vsel %vm602_vm0, %v571_v57, 2147483648  ;;  %v586_v6 = vor.u32 %v2382_v9, %v521_v60  ;;  %v551_v8 = vor.u32 %v2382_v9, %v486_v54 }
  0x30   : > { %3753 = vst [vmem:[#allocation3_spill] sm:$0xff] %v2494_v4  ;;  %v1100_v10 = vshra.s32 %v2494_v4, 16  ;;  %vm380_vm3 = vcmp.ge.s32.totalorder %v2203_v62, 0  ;;  %v444_v11 = vxor.u32 2147418112, %v2203_v62  ;;  %v487_v12 = vsel %vm359_vm2, %v2162_v39, %v423_v55 }
  0x31   : > { %vm360_vm4 = vcmp.ge.s32.totalorder %v2163_v56, 0  ;;  %v424_v13 = vxor.u32 2147418112, %v2163_v56  ;;  %v2500_v15 = vsel %vm602_vm0, %v586_v6, 2147483648  ;;  %v2166_v18 = vunpack.c.l.bf16 %v2267_v3 }
  0x32   : > { %698 = vmax.xlane.f32.xlu0 %v2446_v14  ;;  %3754 = vst [vmem:[#allocation4_spill] sm:$0xff] %v2500_v15  ;;  %v2505_v19 = vcvt.s32.f32 %v1100_v10  ;;  %v1325_v20 = vshra.s32 %v2500_v15, 16  ;;  %v508_v21 = vsel %vm380_vm3, %v2203_v62, %v444_v11  ;;  %v2512_v26 = vcvt.s32.f32 %v755_v46  ;;  %v2268_v62 = vld [vmem:[%s2376_s13 + $0x48] sm:$0xff]  }
  0x33   : > { %v2514_v30 = vcvt.s32.f32 %v770_v63  ;;  %v2167_v32 = vunpack.c.h.bf16 %v2267_v3  ;;  %v573_v34 = vor.u32 %v2382_v9, %v508_v21  ;;  %v2518_v36 = vsel %vm602_vm0, %v550_v2, 2147483648  ;;  %v2538_v63 = vld [vmem:[%s2376_s13 + $0xd0] sm:$0xff]  }
  0x34   : > { %3755 = vst [vmem:[#allocation5_spill] sm:$0xff] %v2505_v19  ;;  %v2521_v39 = vsel %vm602_vm0, %v551_v8, 2147483648  ;;  %1103 = vmax.xlane.f32.xlu1 %v2505_v19  ;;  %v2524_v40 = vcvt.s32.f32 %v1325_v20  ;;  %v2206_v41 = vunpack.c.l.bf16 %v2503_v16  ;;  %v552_v42 = vor.u32 %v2382_v9, %v487_v12 }
  0x35   : > { %v488_v46 = vsel %vm360_vm4, %v2163_v56, %v424_v13  ;;  %v2530_v49 = vsel %vm602_vm0, %v573_v34, 2147483648  ;;  %v2178_v50 = vunpack.c.l.bf16 %v2509_v23  ;;  %v425_v52 = vxor.u32 2147418112, %v2166_v18 }
  0x36   : > { %713 = vmax.xlane.f32.xlu0 %v2462_v25  ;;  %3756 = vst [vmem:[#allocation6_spill] sm:$0xff] %v2524_v40  ;;  %3757 = vst [vmem:[#allocation7_spill] sm:$0xff] %v2530_v49  ;;  %v1130_v54 = vshra.s32 %v2530_v49, 16  ;;  %vm381_vm5 = vcmp.ge.s32.totalorder %v2206_v41, 0  ;;  %v445_v55 = vxor.u32 2147418112, %v2206_v41  ;;  %v785_v57 = vshra.s32 %v2518_v36, 16 }
  0x37   : > { %vm361_vm6 = vcmp.ge.s32.totalorder %v2166_v18, 0  ;;  %v426_v60 = vxor.u32 2147418112, %v2167_v32  ;;  %vm367_vm7 = vcmp.ge.s32.totalorder %v2178_v50, 0  ;;  %vm362_vm8 = vcmp.ge.s32.totalorder %v2167_v32, 0  ;;  %v2603_v49 = vld [vmem:[%s2376_s13 + $0xd8] sm:$0xff]  }
  0x38   : > { %1328 = vmax.xlane.f32.xlu1 %v2524_v40  ;;  %v2541_v56 = vcvt.s32.f32 %v1130_v54  ;;  %v509_v2 = vsel %vm381_vm5, %v2206_v41, %v445_v55  ;;  %v431_v3 = vxor.u32 2147418112, %v2178_v50  ;;  %v800_v6 = vshra.s32 %v2521_v39, 16 }
  0x39   : > { %v2545_v8 = vsel %vm602_vm0, %v552_v42, 2147483648  ;;  %v553_v10 = vor.u32 %v2382_v9, %v488_v46  ;;  %v574_v11 = vor.u32 %v2382_v9, %v509_v2  ;;  %v489_v12 = vsel %vm361_vm6, %v2166_v18, %v425_v52 }
  0x3a   : > { %728 = vmax.xlane.f32.xlu0 %v2476_v44  ;;  %3758 = vst [vmem:[#allocation8_spill] sm:$0xff] %v2541_v56  ;;  %v2170_v13 = vunpack.c.l.bf16 %v2268_v62  ;;  %v495_v20 = vsel %vm367_vm7, %v2178_v50, %v431_v3  ;;  %v2238_v21 = vunpack.c.l.bf16 %v2538_v63  ;;  %v2551_v34 = vcvt.s32.f32 %v785_v57  ;;  %v2561_v50 = vld [vmem:[%s2376_s13 + $0x98] sm:$0xff]  }
  0x3b   : > { %v490_v41 = vsel %vm362_vm8, %v2167_v32, %v426_v60  ;;  %v2554_v54 = vsel %vm602_vm0, %v574_v11, 2147483648  ;;  %v560_v42 = vor.u32 %v2382_v9, %v495_v20  ;;  %v815_v46 = vshra.s32 %v2545_v8, 16 }
  0x3c   : > { %3759 = vst [vmem:[#allocation9_spill] sm:$0xff] %v2554_v54  ;;  %v2171_v55 = vunpack.c.h.bf16 %v2268_v62  ;;  %1133 = vmax.xlane.f32.xlu1 %v2541_v56  ;;  %v1145_v18 = vshra.s32 %v2554_v54, 16  ;;  %vm397_vm9 = vcmp.ge.s32.totalorder %v2238_v21, 0  ;;  %v2564_v52 = vsel %vm602_vm0, %v553_v10, 2147483648 }
  0x3d   : > { %3760 = vst [vmem:[#allocation10_spill] sm:$0xff] %v2564_v52  ;;  %v554_v32 = vor.u32 %v2382_v9, %v489_v12  ;;  %v2568_v57 = vsel %vm602_vm0, %v560_v42, 2147483648  ;;  %v461_v60 = vxor.u32 2147418112, %v2238_v21  ;;  %v555_v62 = vor.u32 %v2382_v9, %v490_v41 }
  0x3e   : > { %743 = vmax.xlane.f32.xlu0 %v2486_v58  ;;  %3761 = vst [vmem:[#allocation11_spill] sm:$0xff] %v2568_v57  ;;  %v427_v2 = vxor.u32 2147418112, %v2170_v13  ;;  %v2571_v3 = vcvt.s32.f32 %v1145_v18  ;;  %v935_v11 = vshra.s32 %v2568_v57, 16  ;;  %v2575_v20 = vcvt.s32.f32 %v800_v6  ;;  %v2585_v57 = vld [vmem:[%s2376_s13 + $0x60] sm:$0xff]  }
  0x3f   : > { %vm363_vm10 = vcmp.ge.s32.totalorder %v2170_v13, 0  ;;  %v525_v10 = vsel %vm397_vm9, %v2238_v21, %v461_v60  ;;  %v2210_v12 = vunpack.c.l.bf16 %v2561_v50  ;;  %v830_v42 = vshra.s32 %v2564_v52, 16 }
  0x40   : > { %3762 = vst [vmem:[#allocation12_spill] sm:$0xff] %v2571_v3  ;;  %3763 = vst [vmem:[#allocation13_spill] sm:$0xff] %v2575_v20  ;;  %v428_v0 = vxor.u32 2147418112, %v2171_v55  ;;  %1148 = vmax.xlane.f32.xlu1 %v2571_v3  ;;  %v2581_v41 = vcvt.s32.f32 %v935_v11  ;;  %v590_v18 = vor.u32 %v2382_v9, %v525_v10  ;;  %v2587_v56 = vcvt.s32.f32 %v815_v46 }
  0x41   : > { %vm364_vm11 = vcmp.ge.s32.totalorder %v2171_v55, 0  ;;  %vm383_vm12 = vcmp.ge.s32.totalorder %v2210_v12, 0  ;;  %v447_v6 = vxor.u32 2147418112, %v2210_v12  ;;  %v2590_v21 = vsel %vm602_vm0, %v554_v32, 2147483648 }
  0x42   : > { %758 = vmax.xlane.f32.xlu0 %v2512_v26  ;;  %3764 = vst [vmem:[#allocation14_spill] sm:$0xff] %v2581_v41  ;;  %3765 = vst [vmem:[#allocation15_spill] sm:$0xff] %v2587_v56  ;;  %v2593_v60 = vsel %vm602_vm0, %v555_v62, 2147483648  ;;  %v491_v3 = vsel %vm363_vm10, %v2170_v13, %v427_v2  ;;  %v2597_v11 = vsel %vm602_vm0, %v590_v18, 2147483648  ;;  %v2174_v10 = vunpack.c.l.bf16 %v2269_v1 }
  0x43   : > { %3766 = vst [vmem:[#allocation16_spill] sm:$0xff] %v2590_v21  ;;  %3767 = vst [vmem:[#allocation17_spill] sm:$0xff] %v2593_v60  ;;  %v1385_v46 = vshra.s32 %v2597_v11, 16  ;;  %v511_v54 = vsel %vm383_vm12, %v2210_v12, %v447_v6  ;;  %v2182_v40 = vunpack.c.l.bf16 %v2585_v57  ;;  %v2605_v32 = vcvt.s32.f32 %v830_v42 }
  0x44   : > { %3768 = vst [vmem:[#allocation18_spill] sm:$0xff] %v2597_v11  ;;  %v492_v19 = vsel %vm364_vm11, %v2171_v55, %v428_v0  ;;  %v2175_v62 = vunpack.c.h.bf16 %v2269_v1  ;;  %938 = vmax.xlane.f32.xlu1 %v2581_v41  ;;  %v576_v13 = vor.u32 %v2382_v9, %v511_v54  ;;  %v845_v2 = vshra.s32 %v2590_v21, 16  ;;  %v2622_v41 = vld [vmem:[%s2376_s13 + $0xa0] sm:$0xff]   ;;  %v2644_v21 = vld [vmem:[%s2376_s13 + $0x68] sm:$0xff]  }
  0x45   : > { %3769 = vst [vmem:[#allocation19_spill] sm:$0xff] %v2605_v32  ;;  %v2610_v18 = vcvt.s32.f32 %v1385_v46  ;;  %vm369_vm13 = vcmp.ge.s32.totalorder %v2182_v40, 0  ;;  %v433_v11 = vxor.u32 2147418112, %v2182_v40  ;;  %v860_v12 = vshra.s32 %v2593_v60, 16 }
  0x46   : > { %773 = vmax.xlane.f32.xlu0 %v2514_v30  ;;  %v556_v6 = vor.u32 %v2382_v9, %v491_v3  ;;  %v2615_v42 = vsel %vm602_vm0, %v576_v13, 2147483648  ;;  %v2242_v0 = vunpack.c.l.bf16 %v2603_v49  ;;  %v557_v1 = vor.u32 %v2382_v9, %v492_v19 }
  0x47   : > { %3770 = vst [vmem:[#allocation20_spill] sm:$0xff] %v2610_v18  ;;  %3771 = vst [vmem:[#allocation21_spill] sm:$0xff] %v2615_v42  ;;  %v429_v54 = vxor.u32 2147418112, %v2174_v10  ;;  %v1175_v55 = vshra.s32 %v2615_v42, 16  ;;  %v497_v46 = vsel %vm369_vm13, %v2182_v40, %v433_v11  ;;  %vm365_vm14 = vcmp.ge.s32.totalorder %v2174_v10, 0 }
  0x48   : > { %v430_v15 = vxor.u32 2147418112, %v2175_v62  ;;  %v2198_v4 = vunpack.c.l.bf16 %v2455_v22  ;;  %1388 = vmax.xlane.f32.xlu1 %v2610_v18  ;;  %v562_v3 = vor.u32 %v2382_v9, %v497_v46  ;;  %vm366_vm15 = vcmp.ge.s32.totalorder %v2175_v62, 0 }
  0x49   : > { %v2627_v13 = vcvt.s32.f32 %v1175_v55  ;;  %vm399_vm1 = vcmp.ge.s32.totalorder %v2242_v0, 0  ;;  %v463_v19 = vxor.u32 2147418112, %v2242_v0  ;;  %v2629_v60 = vcvt.s32.f32 %v845_v2 }
  0x4a   : > { %788 = vmax.xlane.f32.xlu0 %v2551_v34  ;;  %v2632_v40 = vsel %vm602_vm0, %v556_v6, 2147483648  ;;  %v2635_v11 = vsel %vm602_vm0, %v562_v3, 2147483648  ;;  %v2214_v22 = vunpack.c.l.bf16 %v2622_v41  ;;  %v2640_v18 = vsel %vm602_vm0, %v557_v1, 2147483648 }
  0x4b   : > { %3772 = vst [vmem:[#allocation22_spill] sm:$0xff] %v2627_v13  ;;  %3773 = vst [vmem:[#allocation23_spill] sm:$0xff] %v2629_v60  ;;  %v493_v46 = vsel %vm365_vm14, %v2174_v10, %v429_v54  ;;  %v965_v55 = vshra.s32 %v2635_v11, 16  ;;  %v527_v42 = vsel %vm399_vm1, %v2242_v0, %v463_v19  ;;  %v494_v2 = vsel %vm366_vm15, %v2175_v62, %v430_v15 }
  0x4c   : > { %3774 = vst [vmem:[#allocation24_spill] sm:$0xff] %v2632_v40  ;;  %3775 = vst [vmem:[#allocation25_spill] sm:$0xff] %v2635_v11  ;;  %1178 = vmax.xlane.f32.xlu1 %v2627_v13  ;;  %v592_v6 = vor.u32 %v2382_v9, %v527_v42  ;;  %vm385_vm2 = vcmp.ge.s32.totalorder %v2214_v22, 0  ;;  %vm377_vm3 = vcmp.ge.s32.totalorder %v2198_v4, 0  ;;  %v2202_v3 = vunpack.c.l.bf16 %v2483_v48 }
  0x4d   : > { %3776 = vst [vmem:[#allocation26_spill] sm:$0xff] %v2640_v18  ;;  %v449_v1 = vxor.u32 2147418112, %v2214_v22  ;;  %v2651_v52 = vcvt.s32.f32 %v860_v12  ;;  %v2186_v0 = vunpack.c.l.bf16 %v2644_v21  ;;  %v875_v15 = vshra.s32 %v2632_v40, 16 }
  0x4e   : > { %803 = vmax.xlane.f32.xlu0 %v2575_v20  ;;  %v2654_v10 = vsel %vm602_vm0, %v592_v6, 2147483648  ;;  %v890_v62 = vshra.s32 %v2640_v18, 16  ;;  %v558_v54 = vor.u32 %v2382_v9, %v493_v46  ;;  %v559_v12 = vor.u32 %v2382_v9, %v494_v2  ;;  %v2672_v46 = vld [vmem:[%s2376_s13 + $0xe0] sm:$0xff]  }
  0x4f   : > { %3778 = vst [vmem:[#allocation28_spill] sm:$0xff] %v2651_v52  ;;  %3779 = vst [vmem:[#allocation29_spill] sm:$0xff] %v2654_v10  ;;  %v1415_v42 = vshra.s32 %v2654_v10, 16  ;;  %v513_v48 = vsel %vm385_vm2, %v2214_v22, %v449_v1  ;;  %v443_v6 = vxor.u32 2147418112, %v2202_v3  ;;  %vm371_vm4 = vcmp.ge.s32.totalorder %v2186_v0, 0 }
  0x50   : > { %v435_v11 = vxor.u32 2147418112, %v2186_v0  ;;  %vm379_vm5 = vcmp.ge.s32.totalorder %v2202_v3, 0  ;;  %v2231_v10 = vunpack.c.h.bf16 %v2459_v24 }
  0x51   : > { %v2665_v13 = vcvt.s32.f32 %v1415_v42  ;;  %v2680_v42 = vld [vmem:[%s2376_s13 + $0xa8] sm:$0xff]   ;;  %v507_v18 = vsel %vm379_vm5, %v2202_v3, %v443_v6 }
  0x52   : > { %818 = vmax.xlane.f32.xlu0 %v2587_v56  ;;  %v441_v56 = vxor.u32 2147418112, %v2198_v4  ;;  %v499_v1 = vsel %vm371_vm4, %v2186_v0, %v435_v11  ;;  %v2246_v11 = vunpack.c.l.bf16 %v2672_v46  ;;  %v458_v0 = vxor.u32 2147418112, %v2231_v10 }
  0x53   : > { %3780 = vst [vmem:[#allocation30_spill] sm:$0xff] %v2665_v13  ;;  %vm394_vm6 = vcmp.ge.s32.totalorder %v2231_v10, 0 }
  0x54   : > { %v505_v19 = vsel %vm377_vm3, %v2198_v4, %v441_v56  ;;  %v2675_v4 = vcvt.s32.f32 %v875_v15  ;;  %v2284_v56 = vld [vmem:[%s2376_s13 + $0xc8] sm:$0xff]   ;;  %v2691_v15 = vsel %vm602_vm0, %v559_v12, 2147483648  ;;  %vm401_vm7 = vcmp.ge.s32.totalorder %v2246_v11, 0 }
  0x55   : > { %v570_v24 = vor.u32 %v2382_v9, %v505_v19  ;;  %3784 = vst [vmem:[#allocation34_spill] sm:$0xff] %v2691_v15  ;;  %v2218_v19 = vunpack.c.l.bf16 %v2680_v42  ;;  %v920_v3 = vshra.s32 %v2691_v15, 16 }
  0x56   : > { %833 = vmax.xlane.f32.xlu0 %v2605_v32  ;;  %v2649_v32 = vcvt.s32.f32 %v965_v55  ;;  %v578_v55 = vor.u32 %v2382_v9, %v513_v48  ;;  %3782 = vst [vmem:[#allocation32_spill] sm:$0xff] %v2675_v4  ;;  %v2682_v48 = vcvt.s32.f32 %v890_v62  ;;  %v2234_v62 = vunpack.c.l.bf16 %v2284_v56 }
  0x57   : > { %v2706_v6 = vsel %vm602_vm0, %v570_v24, 2147483648  ;;  %vm387_vm8 = vcmp.ge.s32.totalorder %v2218_v19, 0  ;;  %v2722_v20 = vcvt.s32.f32 %v920_v3  ;;  %v2739_v3 = vld [vmem:[%s2376_s13 + $0xe8] sm:$0xff]  }
  0x58   : > { %3777 = vst [vmem:[#allocation27_spill] sm:$0xff] %v2649_v32  ;;  %968 = vmax.xlane.f32.xlu1 %v2649_v32  ;;  %v2669_v22 = vsel %vm602_vm0, %v578_v55, 2147483648  ;;  %v2685_v32 = vsel %vm602_vm0, %v558_v54, 2147483648  ;;  %v564_v55 = vor.u32 %v2382_v9, %v499_v1  ;;  %3787 = vst [vmem:[#allocation37_spill] sm:$0xff] %v2706_v6  ;;  %v459_v40 = vxor.u32 2147418112, %v2234_v62 }
  0x59   : > { %3781 = vst [vmem:[#allocation31_spill] sm:$0xff] %v2669_v22  ;;  %v1205_v2 = vshra.s32 %v2669_v22, 16  ;;  %3783 = vst [vmem:[#allocation33_spill] sm:$0xff] %v2685_v32  ;;  %v905_v1 = vshra.s32 %v2685_v32, 16  ;;  %v522_v32 = vsel %vm394_vm6, %v2231_v10, %v458_v0  ;;  %vm395_vm9 = vcmp.ge.s32.totalorder %v2234_v62, 0 }
  0x5a   : > { %848 = vmax.xlane.f32.xlu0 %v2629_v60  ;;  %v2698_v54 = vsel %vm602_vm0, %v564_v55, 2147483648  ;;  %v572_v55 = vor.u32 %v2382_v9, %v507_v18  ;;  %3790 = vst [vmem:[#allocation40_spill] sm:$0xff] %v2722_v20  ;;  %v1085_v10 = vshra.s32 %v2706_v6, 16  ;;  %v2778_v6 = vld [vmem:[%s2376_s13 + $0x78] sm:$0xff]  }
  0x5b   : > { %v2694_v22 = vcvt.s32.f32 %v1205_v2  ;;  %3786 = vst [vmem:[#allocation36_spill] sm:$0xff] %v2698_v54  ;;  %v995_v12 = vshra.s32 %v2698_v54, 16  ;;  %v465_v2 = vxor.u32 2147418112, %v2246_v11  ;;  %v2235_v54 = vunpack.c.h.bf16 %v2284_v56 }
  0x5c   : > { %1418 = vmax.xlane.f32.xlu1 %v2665_v13  ;;  %v2716_v15 = vcvt.s32.f32 %v905_v1  ;;  %v587_v56 = vor.u32 %v2382_v9, %v522_v32  ;;  %v2730_v0 = vsel %vm602_vm0, %v572_v55, 2147483648 }
  0x5d   : > { %3785 = vst [vmem:[#allocation35_spill] sm:$0xff] %v2694_v22  ;;  %v2710_v13 = vcvt.s32.f32 %v995_v12  ;;  %v529_v60 = vsel %vm401_vm7, %v2246_v11, %v465_v2  ;;  %3792 = vst [vmem:[#allocation42_spill] sm:$0xff] %v2730_v0  ;;  %vm396_vm11 = vcmp.ge.s32.totalorder %v2235_v54, 0 }
  0x5e   : > { %863 = vmax.xlane.f32.xlu0 %v2651_v52  ;;  %v2713_v52 = vld [vmem:[%s2376_s13 + $0x70] sm:$0xff]   ;;  %3789 = vst [vmem:[#allocation39_spill] sm:$0xff] %v2716_v15  ;;  %v594_v24 = vor.u32 %v2382_v9, %v529_v60  ;;  %v523_v60 = vsel %vm395_vm9, %v2234_v62, %v459_v40  ;;  %v1115_v40 = vshra.s32 %v2730_v0, 16  ;;  %v2746_v62 = vsel %vm602_vm0, %v587_v56, 2147483648 }
  0x5f   : > { %3788 = vst [vmem:[#allocation38_spill] sm:$0xff] %v2710_v13  ;;  %v2190_v12 = vunpack.c.l.bf16 %v2713_v52  ;;  %3795 = vst [vmem:[#allocation45_spill] sm:$0xff] %v2746_v62 }
  0x60   : > { %1208 = vmax.xlane.f32.xlu1 %v2694_v22  ;;  %v2727_v11 = vsel %vm602_vm0, %v594_v24, 2147483648 }
  0x61   : > { %3791 = vst [vmem:[#allocation41_spill] sm:$0xff] %v2727_v11  ;;  %vm373_vm10 = vcmp.ge.s32.totalorder %v2190_v12, 0  ;;  %v437_v32 = vxor.u32 2147418112, %v2190_v12 }
  0x62   : > { %878 = vmax.xlane.f32.xlu0 %v2675_v4  ;;  %v451_v4 = vxor.u32 2147418112, %v2218_v19 }
  0x63   : > { %v501_v24 = vsel %vm373_vm10, %v2190_v12, %v437_v32  ;;  %v2179_v12 = vunpack.c.h.bf16 %v2509_v23 }
  0x64   : > { %v515_v22 = vsel %vm387_vm8, %v2218_v19, %v451_v4  ;;  %998 = vmax.xlane.f32.xlu1 %v2710_v13  ;;  %v460_v4 = vxor.u32 2147418112, %v2235_v54  ;;  %v1445_v19 = vshra.s32 %v2727_v11, 16  ;;  %v2749_v13 = vld [vmem:[%s2376_s13 + $0xb0] sm:$0xff]   ;;  %v566_v11 = vor.u32 %v2382_v9, %v501_v24 }
  0x65   : > { %v580_v18 = vor.u32 %v2382_v9, %v515_v22  ;;  %v2207_v22 = vunpack.c.h.bf16 %v2503_v16  ;;  %v588_v16 = vor.u32 %v2382_v9, %v523_v60  ;;  %v2222_v32 = vunpack.c.l.bf16 %v2749_v13 }
  0x66   : > { %893 = vmax.xlane.f32.xlu0 %v2682_v48  ;;  %v2741_v2 = vcvt.s32.f32 %v1445_v19  ;;  %v2250_v19 = vunpack.c.l.bf16 %v2739_v3  ;;  %v524_v0 = vsel %vm396_vm11, %v2235_v54, %v460_v4  ;;  %v2762_v60 = vsel %vm602_vm0, %v566_v11, 2147483648 }
  0x67   : > { %v2736_v1 = vsel %vm602_vm0, %v580_v18, 2147483648  ;;  %v446_v56 = vxor.u32 2147418112, %v2207_v22  ;;  %vm382_vm12 = vcmp.ge.s32.totalorder %v2207_v22, 0  ;;  %3797 = vst [vmem:[#allocation47_spill] sm:$0xff] %v2762_v60  ;;  %v1025_v24 = vshra.s32 %v2762_v60, 16 }
  0x68   : > { %3793 = vst [vmem:[#allocation43_spill] sm:$0xff] %v2736_v1  ;;  %3794 = vst [vmem:[#allocation44_spill] sm:$0xff] %v2741_v2  ;;  %v1235_v55 = vshra.s32 %v2736_v1, 16  ;;  %1448 = vmax.xlane.f32.xlu1 %v2741_v2  ;;  %v2758_v1 = vcvt.s32.f32 %v1085_v10  ;;  %vm403_vm13 = vcmp.ge.s32.totalorder %v2250_v19, 0  ;;  %v467_v2 = vxor.u32 2147418112, %v2250_v19 }
  0x69   : > { %v2770_v54 = vsel %vm602_vm0, %v588_v16, 2147483648  ;;  %v589_v23 = vor.u32 %v2382_v9, %v524_v0  ;;  %v510_v10 = vsel %vm382_vm12, %v2207_v22, %v446_v56  ;;  %v432_v11 = vxor.u32 2147418112, %v2179_v12 }
  0x6a   : > { %908 = vmax.xlane.f32.xlu0 %v2716_v15  ;;  %v2753_v18 = vcvt.s32.f32 %v1235_v55  ;;  %v1340_v55 = vshra.s32 %v2746_v62, 16  ;;  %3798 = vst [vmem:[#allocation48_spill] sm:$0xff] %v2770_v54  ;;  %v2775_v4 = vcvt.s32.f32 %v1025_v24  ;;  %v531_v62 = vsel %vm403_vm13, %v2250_v19, %v467_v2 }
  0x6b   : > { %v2239_v60 = vunpack.c.h.bf16 %v2538_v63  ;;  %vm389_vm14 = vcmp.ge.s32.totalorder %v2222_v32, 0  ;;  %v453_v16 = vxor.u32 2147418112, %v2222_v32  ;;  %vm368_vm15 = vcmp.ge.s32.totalorder %v2179_v12, 0 }
  0x6c   : > { %3796 = vst [vmem:[#allocation46_spill] sm:$0xff] %v2753_v18  ;;  %1238 = vmax.xlane.f32.xlu1 %v2753_v18  ;;  %3799 = vst [vmem:[#allocation49_spill] sm:$0xff] %v2775_v4  ;;  %v2782_v15 = vcvt.s32.f32 %v1340_v55  ;;  %v1355_v0 = vshra.s32 %v2770_v54, 16  ;;  %v2194_v19 = vunpack.c.l.bf16 %v2778_v6  ;;  %v2792_v63 = vsel %vm602_vm0, %v589_v23, 2147483648 }
  0x6d   : > { %v517_v2 = vsel %vm389_vm14, %v2222_v32, %v453_v16  ;;  %3802 = vst [vmem:[#allocation52_spill] sm:$0xff] %v2792_v63  ;;  %v496_v24 = vsel %vm368_vm15, %v2179_v12, %v432_v11  ;;  %vm398_vm1 = vcmp.ge.s32.totalorder %v2239_v60, 0  ;;  %v2211_v32 = vunpack.c.h.bf16 %v2561_v50 }
  0x6e   : > { %923 = vmax.xlane.f32.xlu0 %v2722_v20  ;;  %v2767_v20 = vcvt.s32.f32 %v1115_v40  ;;  %v596_v40 = vor.u32 %v2382_v9, %v531_v62  ;;  %3800 = vst [vmem:[#allocation50_spill] sm:$0xff] %v2782_v15  ;;  %v575_v62 = vor.u32 %v2382_v9, %v510_v10  ;;  %v582_v55 = vor.u32 %v2382_v9, %v517_v2 }
  0x6f   : > { %vm375_vm2 = vcmp.ge.s32.totalorder %v2194_v19, 0  ;;  %v439_v23 = vxor.u32 2147418112, %v2194_v19  ;;  %v2806_v54 = vcvt.s32.f32 %v1355_v0  ;;  %v1370_v12 = vshra.s32 %v2792_v63, 16 }
  0x70   : > { %1028 = vmax.xlane.f32.xlu1 %v2775_v4  ;;  %v2787_v22 = vsel %vm602_vm0, %v596_v40, 2147483648  ;;  %v462_v4 = vxor.u32 2147418112, %v2239_v60  ;;  %v2798_v40 = vld [vmem:[%s2376_s13 + $0xf0] sm:$0xff]   ;;  %v2804_v18 = vsel %vm602_vm0, %v582_v55, 2147483648  ;;  %v2812_v11 = vsel %vm602_vm0, %v575_v62, 2147483648 }
  0x71   : > { %3801 = vst [vmem:[#allocation51_spill] sm:$0xff] %v2787_v22  ;;  %v1475_v56 = vshra.s32 %v2787_v22, 16  ;;  %3804 = vst [vmem:[#allocation54_spill] sm:$0xff] %v2804_v18  ;;  %v1265_v10 = vshra.s32 %v2804_v18, 16  ;;  %v503_v50 = vsel %vm375_vm2, %v2194_v19, %v439_v23  ;;  %v2254_v2 = vunpack.c.l.bf16 %v2798_v40 }
  0x72   : > { %1088 = vmax.xlane.f32.xlu0 %v2758_v1  ;;  %3805 = vst [vmem:[#allocation55_spill] sm:$0xff] %v2812_v11  ;;  %v526_v55 = vsel %vm398_vm1, %v2239_v60, %v462_v4  ;;  %v568_v18 = vor.u32 %v2382_v9, %v503_v50  ;;  %v448_v22 = vxor.u32 2147418112, %v2211_v32  ;;  %vm384_vm4 = vcmp.ge.s32.totalorder %v2211_v32, 0 }
  0x73   : > { %v2801_v16 = vcvt.s32.f32 %v1475_v56  ;;  %v561_v56 = vor.u32 %v2382_v9, %v496_v24  ;;  %v2818_v0 = vcvt.s32.f32 %v1265_v10  ;;  %vm405_vm3 = vcmp.ge.s32.totalorder %v2254_v2, 0 }
  0x74   : > { %v469_v63 = vxor.u32 2147418112, %v2254_v2  ;;  %v2823_v62 = vsel %vm602_vm0, %v568_v18, 2147483648  ;;  %v2826_v19 = vcvt.s32.f32 %v1370_v12  ;;  %v1160_v24 = vshra.s32 %v2812_v11, 16 }
  0x75   : > { %3803 = vst [vmem:[#allocation53_spill] sm:$0xff] %v2801_v16  ;;  %1478 = vmax.xlane.f32.xlu1 %v2801_v16  ;;  %3806 = vst [vmem:[#allocation56_spill] sm:$0xff] %v2818_v0  ;;  %v1055_v60 = vshra.s32 %v2823_v62, 16  ;;  %v2832_v23 = vsel %vm602_vm0, %v561_v56, 2147483648  ;;  %v512_v18 = vsel %vm384_vm4, %v2211_v32, %v448_v22  ;;  %v2243_v16 = vunpack.c.h.bf16 %v2603_v49 }
  0x76   : > { %1118 = vmax.xlane.f32.xlu0 %v2767_v20  ;;  %3807 = vst [vmem:[#allocation57_spill] sm:$0xff] %v2823_v62  ;;  %v533_v4 = vsel %vm405_vm3, %v2254_v2, %v469_v63  ;;  %v2843_v63 = vcvt.s32.f32 %v1160_v24  ;;  %v950_v2 = vshra.s32 %v2832_v23, 16  ;;  %v577_v49 = vor.u32 %v2382_v9, %v512_v18 }
  0x77   : > { %v598_v10 = vor.u32 %v2382_v9, %v533_v4  ;;  %v2837_v12 = vcvt.s32.f32 %v1055_v60  ;;  %v2215_v60 = vunpack.c.h.bf16 %v2622_v41  ;;  %vm400_vm6 = vcmp.ge.s32.totalorder %v2243_v16, 0 }
  0x78   : > { %v2856_v24 = vcvt.s32.f32 %v950_v2  ;;  %v2187_v41 = vunpack.c.h.bf16 %v2644_v21 }
  0x79   : > { %1268 = vmax.xlane.f32.xlu1 %v2818_v0  ;;  %3808 = vst [vmem:[#allocation58_spill] sm:$0xff] %v2837_v12  ;;  %v2840_v11 = vsel %vm602_vm0, %v598_v10, 2147483648  ;;  %vm386_vm7 = vcmp.ge.s32.totalorder %v2215_v60, 0 }
  0x7a   : > { %1343 = vmax.xlane.f32.xlu0 %v2782_v15  ;;  %v2183_v15 = vunpack.c.h.bf16 %v2585_v57  ;;  %v591_v57 = vor.u32 %v2382_v9, %v526_v55  ;;  %3809 = vst [vmem:[#allocation59_spill] sm:$0xff] %v2840_v11  ;;  %v1505_v56 = vshra.s32 %v2840_v11, 16  ;;  %v464_v55 = vxor.u32 2147418112, %v2243_v16 }
  0x7b   : > { %v436_v0 = vxor.u32 2147418112, %v2187_v41  ;;  %vm372_vm8 = vcmp.ge.s32.totalorder %v2187_v41, 0 }
  0x7c   : > { %v434_v50 = vxor.u32 2147418112, %v2183_v15  ;;  %vm370_vm5 = vcmp.ge.s32.totalorder %v2183_v15, 0  ;;  %v2849_v22 = vsel %vm602_vm0, %v591_v57, 2147483648  ;;  %v2853_v4 = vcvt.s32.f32 %v1505_v56 }
  0x7d   : > { %1058 = vmax.xlane.f32.xlu1 %v2837_v12  ;;  %v1400_v10 = vshra.s32 %v2849_v22, 16  ;;  %v2861_v57 = vsel %vm602_vm0, %v577_v49, 2147483648 }
  0x7e   : > { %1358 = vmax.xlane.f32.xlu0 %v2806_v54  ;;  %v498_v32 = vsel %vm370_vm5, %v2183_v15, %v434_v50  ;;  %3810 = vst [vmem:[#allocation60_spill] sm:$0xff] %v2853_v4  ;;  %v528_v15 = vsel %vm400_vm6, %v2243_v16, %v464_v55  ;;  %v450_v50 = vxor.u32 2147418112, %v2215_v60  ;;  %v1190_v2 = vshra.s32 %v2861_v57, 16 }
  0x7f   : > { %v563_v18 = vor.u32 %v2382_v9, %v498_v32  ;;  %v2866_v56 = vcvt.s32.f32 %v1400_v10  ;;  %v2247_v32 = vunpack.c.h.bf16 %v2672_v46 }
  0x80   : > { %v514_v49 = vsel %vm386_vm7, %v2215_v60, %v450_v50  ;;  %v2875_v21 = vcvt.s32.f32 %v1190_v2 }
  0x81   : > { %1508 = vmax.xlane.f32.xlu1 %v2853_v4  ;;  %v2870_v12 = vsel %vm602_vm0, %v563_v18, 2147483648  ;;  %v593_v4 = vor.u32 %v2382_v9, %v528_v15  ;;  %v579_v10 = vor.u32 %v2382_v9, %v514_v49  ;;  %v500_v18 = vsel %vm372_vm8, %v2187_v41, %v436_v0 }
  0x82   : > { %1373 = vmax.xlane.f32.xlu0 %v2826_v19  ;;  %3811 = vst [vmem:[#allocation61_spill] sm:$0xff] %v2875_v21  ;;  %v980_v16 = vshra.s32 %v2870_v12, 16  ;;  %v466_v11 = vxor.u32 2147418112, %v2247_v32  ;;  %v2219_v15 = vunpack.c.h.bf16 %v2680_v42  ;;  %vm402_vm9 = vcmp.ge.s32.totalorder %v2247_v32, 0 }
  0x83   : > { %v2879_v55 = vsel %vm602_vm0, %v593_v4, 2147483648  ;;  %v2888_v50 = vsel %vm602_vm0, %v579_v10, 2147483648  ;;  %v565_v2 = vor.u32 %v2382_v9, %v500_v18  ;;  %v2191_v49 = vunpack.c.h.bf16 %v2713_v52 }
  0x84   : > { %v2884_v46 = vcvt.s32.f32 %v980_v16  ;;  %v1430_v60 = vshra.s32 %v2879_v55, 16  ;;  %v530_v4 = vsel %vm402_vm9, %v2247_v32, %v466_v11  ;;  %v452_v62 = vxor.u32 2147418112, %v2219_v15 }
  0x85   : > { %vm388_vm10 = vcmp.ge.s32.totalorder %v2219_v15, 0  ;;  %v1220_v0 = vshra.s32 %v2888_v50, 16  ;;  %v2897_v41 = vsel %vm602_vm0, %v565_v2, 2147483648  ;;  %v595_v16 = vor.u32 %v2382_v9, %v530_v4 }
  0x86   : > { %1163 = vmax.xlane.f32.xlu0 %v2843_v63  ;;  %3812 = vst [vmem:[#allocation62_spill] sm:$0xff] %v2884_v46  ;;  %v2893_v42 = vcvt.s32.f32 %v1430_v60  ;;  %v516_v10 = vsel %vm388_vm10, %v2219_v15, %v452_v62  ;;  %v2251_v18 = vunpack.c.h.bf16 %v2739_v3  ;;  %vm374_vm11 = vcmp.ge.s32.totalorder %v2191_v49, 0 }
  0x87   : > { %v2902_v52 = vcvt.s32.f32 %v1220_v0  ;;  %v1010_v11 = vshra.s32 %v2897_v41, 16  ;;  %v2906_v32 = vsel %vm602_vm0, %v595_v16, 2147483648  ;;  %v581_v60 = vor.u32 %v2382_v9, %v516_v10 }
  0x88   : > { %3813 = vst [vmem:[#allocation63_spill] sm:$0xff] %v2893_v42  ;;  %v2223_v4 = vunpack.c.h.bf16 %v2749_v13  ;;  %vm404_vm12 = vcmp.ge.s32.totalorder %v2251_v18, 0  ;;  %v1460_v62 = vshra.s32 %v2906_v32, 16  ;;  %v619_v10 = vand.u32 65535, %v2390_v28 }
  0x89   : > { %3814 = vst [vmem:[#allocation64_spill] sm:$0xff] %v2902_v52  ;;  %v2911_v3 = vcvt.s32.f32 %v1010_v11  ;;  %v2915_v15 = vsel %vm602_vm0, %v581_v60, 2147483648 }
  0x8a   : > { %953 = vmax.xlane.f32.xlu0 %v2856_v24  ;;  %vm390_vm13 = vcmp.ge.s32.totalorder %v2223_v4, 0  ;;  %v2920_v13 = vcvt.s32.f32 %v1460_v62 }
  0x8b   : > { %3815 = vst [vmem:[#allocation65_spill] sm:$0xff] %v2911_v3 }
  0x8c   : > { %3816 = vst [vmem:[#allocation66_spill] sm:$0xff] %v2920_v13 }
  0x8e   : > { %1403 = vmax.xlane.f32.xlu0 %v2866_v56 }
  0x92   : > { %1193 = vmax.xlane.f32.xlu0 %v2875_v21  ;;  %v438_v21 = vxor.u32 2147418112, %v2191_v49 }
  0x94   : > { %v502_v2 = vsel %vm374_vm11, %v2191_v49, %v438_v21  ;;  %v1250_v21 = vshra.s32 %v2915_v15, 16 }
  0x95   : > { %v567_v0 = vor.u32 %v2382_v9, %v502_v2  ;;  %v621_v2 = vcvt.s32.f32 %v619_v10  ;;  %v649_v10 = vand.u32 65535, %v2402_v35 }
  0x96   : > { %983 = vmax.xlane.f32.xlu0 %v2884_v46  ;;  %v468_v46 = vxor.u32 2147418112, %v2251_v18  ;;  %v2930_v28 = vcvt.s32.f32 %v1250_v21  ;;  %v2946_v21 = vld [vmem:[%s2376_s13 + $0xf8] sm:$0xff]  }
  0x97   : > { %v2924_v49 = vsel %vm602_vm0, %v567_v0, 2147483648 }
  0x98   : > { %v532_v16 = vsel %vm404_vm12, %v2251_v18, %v468_v46  ;;  %v634_v46 = vand.u32 65535, %v2398_v33  ;;  %3817 = vst [vmem:[#allocation67_spill] sm:$0xff] %v2930_v28  ;;  %v1040_v18 = vshra.s32 %v2924_v49, 16  ;;  %v2255_v33 = vunpack.c.h.bf16 %v2798_v40 }
  0x99   : > { %v597_v11 = vor.u32 %v2382_v9, %v532_v16 }
  0x9a   : > { %1433 = vmax.xlane.f32.xlu0 %v2893_v42  ;;  %v454_v42 = vxor.u32 2147418112, %v2223_v4  ;;  %v636_v16 = vcvt.s32.f32 %v634_v46  ;;  %v470_v35 = vxor.u32 2147418112, %v2255_v33  ;;  %vm406_vm2 = vcmp.ge.s32.totalorder %v2255_v33, 0 }
  0x9b   : > { %v2938_v0 = vsel %vm602_vm0, %v597_v11, 2147483648  ;;  %v2949_v11 = vcvt.s32.f32 %v1040_v18 }
  0x9c   : > { %v518_v60 = vsel %vm390_vm13, %v2223_v4, %v454_v42 }
  0x9d   : > { %v583_v42 = vor.u32 %v2382_v9, %v518_v60  ;;  %3819 = vst [vmem:[#allocation69_spill] sm:$0xff] %v2949_v11  ;;  %v1490_v60 = vshra.s32 %v2938_v0, 16 }
  0x9e   : > { %1223 = vmax.xlane.f32.xlu0 %v2902_v52  ;;  %v2195_v52 = vunpack.c.h.bf16 %v2778_v6 }
  0x9f   : > { %v2962_v18 = vcvt.s32.f32 %v1490_v60 }
  0xa0   : > { %v440_v6 = vxor.u32 2147418112, %v2195_v52  ;;  %vm376_vm15 = vcmp.ge.s32.totalorder %v2195_v52, 0 }
  0xa2   : > { %1013 = vmax.xlane.f32.xlu0 %v2911_v3  ;;  %v504_v40 = vsel %vm376_vm15, %v2195_v52, %v440_v6  ;;  %v679_v52 = vand.u32 65535, %v2425_v53  ;;  %v534_v6 = vsel %vm406_vm2, %v2255_v33, %v470_v35  ;;  %v694_v35 = vand.u32 65535, %v2433_v61 }
  0xa4   : > { %v681_v33 = vcvt.s32.f32 %v679_v52  ;;  %v709_v52 = vand.u32 65535, %v2441_v7 }
  0xa6   : > { %1463 = vmax.xlane.f32.xlu0 %v2920_v13 }
  0xa7   : > { %v2933_v62 = vpop.xlane.xlu1 %623  ;;  %v2935_v3 = vpop.xlane.xlu0 %608 }
  0xa8   : > { %3818 = vst [vmem:[#allocation68_spill] sm:$0xff] %v2933_v62  ;;  %vm625_vm14 = vcmp.eq.f32.partialorder %v2405_v37, %v2933_v62  ;;  %v2955_v37 = vsel %vm602_vm0, %v583_v42, 2147483648  ;;  %vm610_vm6 = vcmp.eq.f32.partialorder %v2407_v38, %v2935_v3 }
  0xa9   : > { %v626_v4 = vsel %vm625_vm14, %v621_v2, -inf  ;;  %v2258_v2 = vunpack.c.l.bf16 %v2946_v21  ;;  %v1280_v42 = vshra.s32 %v2955_v37, 16 }
  0xaa   : > { %627 = vmax.xlane.f32.xlu1 %v626_v4  ;;  %1253 = vmax.xlane.f32.xlu0 %v2930_v28  ;;  %v651_v4 = vcvt.s32.f32 %v649_v10  ;;  %v664_v28 = vand.u32 65535, %v2416_v45 }
  0xab   : > { %v2952_v13 = vpop.xlane.xlu0 %638  ;;  %vm407_vm4 = vcmp.ge.s32.totalorder %v2258_v2, 0  ;;  %v2973_v60 = vcvt.s32.f32 %v1280_v42 }
  0xac   : > { %vm640_vm1 = vcmp.eq.f32.partialorder %v2412_v43, %v2952_v13  ;;  %v569_v43 = vor.u32 %v2382_v9, %v504_v40  ;;  %v666_v10 = vcvt.s32.f32 %v664_v28 }
  0xad   : > { %v641_v46 = vsel %vm640_vm1, %v636_v16, -inf  ;;  %v471_v16 = vxor.u32 2147418112, %v2258_v2 }
  0xae   : > { %1043 = vmax.xlane.f32.xlu0 %v2949_v11  ;;  %642 = vmax.xlane.f32.xlu1 %v641_v46  ;;  %v604_v11 = vand.u32 65535, %v2393_v29  ;;  %v2978_v40 = vsel %vm602_vm0, %v569_v43, 2147483648 }
  0xaf   : > { %v2965_v62 = vpop.xlane.xlu0 %653  ;;  %v535_v53 = vsel %vm407_vm4, %v2258_v2, %v471_v16  ;;  %v696_v2 = vcvt.s32.f32 %v694_v35 }
  0xb0   : > { %vm655_vm3 = vcmp.eq.f32.partialorder %v2421_v51, %v2965_v62  ;;  %v599_v51 = vor.u32 %v2382_v9, %v534_v6  ;;  %v606_v29 = vcvt.s32.f32 %v604_v11 }
  0xb1   : > { %v656_v45 = vsel %vm655_vm3, %v651_v4, -inf  ;;  %v1070_v4 = vshra.s32 %v2978_v40, 16 }
  0xb2   : > { %1493 = vmax.xlane.f32.xlu0 %v2962_v18  ;;  %657 = vmax.xlane.f32.xlu1 %v656_v45  ;;  %v2991_v43 = vsel %vm602_vm0, %v599_v51, 2147483648  ;;  %v611_v61 = vsel %vm610_vm6, %v606_v29, -inf  ;;  %v724_v51 = vand.u32 65535, %v2451_v17 }
  0xb3   : > { %v2975_v46 = vpop.xlane.xlu0 %668  ;;  %v2997_v38 = vcvt.s32.f32 %v1070_v4  ;;  %v1520_v6 = vshra.s32 %v2991_v43, 16 }
  0xb4   : > { %vm670_vm5 = vcmp.eq.f32.partialorder %v2429_v59, %v2975_v46  ;;  %v600_v59 = vor.u32 %v2382_v9, %v535_v53  ;;  %v726_v29 = vcvt.s32.f32 %v724_v51 }
  0xb5   : > { %v671_v28 = vsel %vm670_vm5, %v666_v10, -inf  ;;  %v711_v10 = vcvt.s32.f32 %v709_v52  ;;  %v3009_v7 = vcvt.s32.f32 %v1520_v6  ;;  %v769_v52 = vand.u32 65535, %v2480_v47 }
  0xb6   : > { %1283 = vmax.xlane.f32.xlu0 %v2973_v60  ;;  %672 = vmax.xlane.f32.xlu1 %v671_v28  ;;  %v3003_v45 = vsel %vm602_vm0, %v600_v59, 2147483648 }
  0xb7   : > { %v2988_v42 = vpop.xlane.xlu0 %683  ;;  %v1535_v53 = vshra.s32 %v3003_v45, 16  ;;  %v771_v6 = vcvt.s32.f32 %v769_v52 }
  0xb8   : > { %vm685_vm7 = vcmp.eq.f32.partialorder %v2437_v5, %v2988_v42 }
  0xb9   : > { %v686_v11 = vsel %vm685_vm7, %v681_v33, -inf  ;;  %v3018_v17 = vcvt.s32.f32 %v1535_v53  ;;  %v799_v53 = vand.u32 65535, %v2521_v39 }
  0xba   : > { %687 = vmax.xlane.f32.xlu1 %v686_v11  ;;  %612 = vmax.xlane.f32.xlu0 %v611_v61  ;;  %v754_v11 = vand.u32 65535, %v2470_v31 }
  0xbb   : > { %v3000_v16 = vpop.xlane.xlu0 %698 }
  0xbc   : > { %vm700_vm8 = vcmp.eq.f32.partialorder %v2446_v14, %v3000_v16  ;;  %v739_v14 = vand.u32 65535, %v2466_v27 }
  0xbd   : > { %v701_v5 = vsel %vm700_vm8, %v696_v2, -inf  ;;  %v3030_v27 = vpop.xlane.xlu1 %1103  ;;  %v756_v2 = vcvt.s32.f32 %v754_v11  ;;  %v3825_v11 = vld [vmem:[#allocation10_spill] sm:$0xff] }
  0xbe   : > { %702 = vmax.xlane.f32.xlu1 %v701_v5  ;;  %1073 = vmax.xlane.f32.xlu0 %v2997_v38  ;;  %v741_v59 = vcvt.s32.f32 %v739_v14  ;;  %v784_v5 = vand.u32 65535, %v2518_v36  ;;  %v814_v14 = vand.u32 65535, %v2545_v8 }
  0xbf   : > { %v3012_v28 = vpop.xlane.xlu0 %713 }
  0xc0   : > { %vm715_vm9 = vcmp.eq.f32.partialorder %v2462_v25, %v3012_v28  ;;  %v786_v47 = vcvt.s32.f32 %v784_v5  ;;  %v816_v39 = vcvt.s32.f32 %v814_v14  ;;  %v3831_v14 = vld [vmem:[#allocation17_spill] sm:$0xff] }
  0xc1   : > { %v716_v33 = vsel %vm715_vm9, %v711_v10, -inf  ;;  %v3038_v10 = vpop.xlane.xlu1 %1328 }
  0xc2   : > { %717 = vmax.xlane.f32.xlu1 %v716_v33  ;;  %1523 = vmax.xlane.f32.xlu0 %v3009_v7 }
  0xc3   : > { %v3020_v35 = vpop.xlane.xlu0 %728 }
  0xc4   : > { %vm730_vm10 = vcmp.eq.f32.partialorder %v2476_v44, %v3020_v35 }
  0xc5   : > { %v731_v4 = vsel %vm730_vm10, %v726_v29, -inf  ;;  %v801_v29 = vcvt.s32.f32 %v799_v53  ;;  %v3830_v53 = vld [vmem:[#allocation19_spill] sm:$0xff] }
  0xc6   : > { %732 = vmax.xlane.f32.xlu1 %v731_v4  ;;  %1538 = vmax.xlane.f32.xlu0 %v3018_v17 }
  0xc7   : > { %v3026_v25 = vpop.xlane.xlu0 %743 }
  0xc8   : > { %vm745_vm11 = vcmp.eq.f32.partialorder %v2486_v58, %v3026_v25 }
  0xc9   : > { %v746_v61 = vsel %vm745_vm11, %v741_v59, -inf }
  0xca   : > { %747 = vmax.xlane.f32.xlu1 %v746_v61  ;;  %v829_v61 = vand.u32 65535, %v3825_v11 }
  0xcb   : > { %v3033_v44 = vpop.xlane.xlu0 %758 }
  0xcc   : > { %3820 = vst [vmem:[#allocation70_spill] sm:$0xff] %v3033_v44  ;;  %vm760_vm12 = vcmp.eq.f32.partialorder %v2512_v26, %v3033_v44  ;;  %v3047_v26 = vpop.xlane.xlu1 %1133 }
  0xcd   : > { %v761_v31 = vsel %vm760_vm12, %v756_v2, -inf }
  0xce   : > { %762 = vmax.xlane.f32.xlu1 %v761_v31  ;;  %v831_v31 = vcvt.s32.f32 %v829_v61 }
  0xcf   : > { %v3040_v58 = vpop.xlane.xlu0 %773 }
  0xd0   : > { %3821 = vst [vmem:[#allocation71_spill] sm:$0xff] %v3040_v58  ;;  %vm775_vm13 = vcmp.eq.f32.partialorder %v2514_v30, %v3040_v58  ;;  %v3824_v30 = vld [vmem:[#allocation13_spill] sm:$0xff]  ;;  %v3057_v2 = vpop.xlane.xlu1 %1148 }
  0xd1   : > { %v776_v51 = vsel %vm775_vm13, %v771_v6, -inf  ;;  %v3828_v6 = vld [vmem:[#allocation16_spill] sm:$0xff] }
  0xd2   : > { %777 = vmax.xlane.f32.xlu1 %v776_v51  ;;  %v844_v5 = vand.u32 65535, %v3828_v6  ;;  %v3834_v6 = vld [vmem:[#allocation24_spill] sm:$0xff] }
  0xd3   : > { %v3045_v33 = vpop.xlane.xlu0 %788 }
  0xd4   : > { %3822 = vst [vmem:[#allocation72_spill] sm:$0xff] %v3045_v33  ;;  %vm790_vm14 = vcmp.eq.f32.partialorder %v2551_v34, %v3045_v33  ;;  %v3827_v34 = vld [vmem:[#allocation15_spill] sm:$0xff]  ;;  %v3837_v33 = vld [vmem:[#allocation26_spill] sm:$0xff] }
  0xd5   : > { %v791_v36 = vsel %vm790_vm14, %v786_v47, -inf  ;;  %v3066_v47 = vpop.xlane.xlu1 %938  ;;  %v889_v58 = vand.u32 65535, %v3837_v33 }
  0xd6   : > { %792 = vmax.xlane.f32.xlu1 %v791_v36 }
  0xd7   : > { %v3052_v4 = vpop.xlane.xlu0 %803 }
  0xd8   : > { %3823 = vst [vmem:[#allocation73_spill] sm:$0xff] %v3052_v4  ;;  %vm805_vm15 = vcmp.eq.f32.partialorder %v3824_v30, %v3052_v4  ;;  %v859_v30 = vand.u32 65535, %v3831_v14 }
  0xd9   : > { %v806_v59 = vsel %vm805_vm15, %v801_v29, -inf  ;;  %v846_v29 = vcvt.s32.f32 %v844_v5  ;;  %v3077_v4 = vpop.xlane.xlu1 %1388 }
  0xda   : > { %807 = vmax.xlane.f32.xlu1 %v806_v59  ;;  %v2282_v59 = vld [vmem:[%s2376_s13 + $0xb8] sm:$0xff]  }
  0xdb   : > { %v3059_v52 = vpop.xlane.xlu0 %818  ;;  %v2226_v61 = vunpack.c.l.bf16 %v2282_v59 }
  0xdc   : > { %3826 = vst [vmem:[#allocation13_spill] sm:$0xff] %v3059_v52  ;;  %vm820_vm1 = vcmp.eq.f32.partialorder %v3827_v34, %v3059_v52  ;;  %v874_v52 = vand.u32 65535, %v3834_v6 }
  0xdd   : > { %v821_v8 = vsel %vm820_vm1, %v816_v39, -inf  ;;  %v3833_v39 = vld [vmem:[#allocation23_spill] sm:$0xff]  ;;  %v455_v5 = vxor.u32 2147418112, %v2226_v61  ;;  %vm391_vm5 = vcmp.ge.s32.totalorder %v2226_v61, 0 }
  0xde   : > { %822 = vmax.xlane.f32.xlu1 %v821_v8  ;;  %v861_v8 = vcvt.s32.f32 %v859_v30  ;;  %v3086_v30 = vpop.xlane.xlu1 %1178 }
  0xdf   : > { %v3064_v51 = vpop.xlane.xlu0 %833  ;;  %3839 = vst [vmem:[#allocation17_spill] sm:$0xff] %v3086_v30 }
  0xe0   : > { %3829 = vst [vmem:[#allocation10_spill] sm:$0xff] %v3064_v51  ;;  %vm835_vm2 = vcmp.eq.f32.partialorder %v3830_v53, %v3064_v51  ;;  %v876_v51 = vcvt.s32.f32 %v874_v52 }
  0xe1   : > { %v836_v36 = vsel %vm835_vm2, %v831_v31, -inf  ;;  %v3836_v31 = vld [vmem:[#allocation28_spill] sm:$0xff] }
  0xe2   : > { %837 = vmax.xlane.f32.xlu1 %v836_v36  ;;  %v2227_v36 = vunpack.c.h.bf16 %v2282_v59  ;;  %v3841_v59 = vld [vmem:[#allocation33_spill] sm:$0xff] }
  0xe3   : > { %v3072_v11 = vpop.xlane.xlu0 %848 }
  0xe4   : > { %3832 = vst [vmem:[#allocation15_spill] sm:$0xff] %v3072_v11  ;;  %vm850_vm3 = vcmp.eq.f32.partialorder %v3833_v39, %v3072_v11  ;;  %v3840_v39 = vld [vmem:[#allocation32_spill] sm:$0xff]  ;;  %v456_v6 = vxor.u32 2147418112, %v2227_v36  ;;  %v2259_v11 = vunpack.c.h.bf16 %v2946_v21  ;;  %vm392_vm7 = vcmp.ge.s32.totalorder %v2227_v36, 0  ;;  %v3098_v21 = vpop.xlane.xlu1 %968 }
  0xe5   : > { %v851_v34 = vsel %vm850_vm3, %v846_v29, -inf  ;;  %3844 = vst [vmem:[#allocation24_spill] sm:$0xff] %v3098_v21 }
  0xe6   : > { %852 = vmax.xlane.f32.xlu1 %v851_v34  ;;  %v519_v34 = vsel %vm391_vm5, %v2226_v61, %v455_v5  ;;  %v472_v44 = vxor.u32 2147418112, %v2259_v11  ;;  %v3843_v5 = vld [vmem:[#allocation34_spill] sm:$0xff]  ;;  %vm408_vm9 = vcmp.ge.s32.totalorder %v2259_v11, 0 }
  0xe7   : > { %v3079_v53 = vpop.xlane.xlu0 %863  ;;  %v584_v52 = vor.u32 %v2382_v9, %v519_v34 }
  0xe8   : > { %3835 = vst [vmem:[#allocation16_spill] sm:$0xff] %v3079_v53  ;;  %vm865_vm4 = vcmp.eq.f32.partialorder %v3836_v31, %v3079_v53  ;;  %v891_v53 = vcvt.s32.f32 %v889_v58 }
  0xe9   : > { %v866_v14 = vsel %vm865_vm4, %v861_v8, -inf  ;;  %v904_v8 = vand.u32 65535, %v3841_v59 }
  0xea   : > { %867 = vmax.xlane.f32.xlu1 %v866_v14  ;;  %v520_v14 = vsel %vm392_vm7, %v2227_v36, %v456_v6  ;;  %v3847_v6 = vld [vmem:[#allocation37_spill] sm:$0xff] }
  0xeb   : > { %v3084_v29 = vpop.xlane.xlu0 %878  ;;  %v906_v61 = vcvt.s32.f32 %v904_v8  ;;  %v585_v34 = vor.u32 %v2382_v9, %v520_v14  ;;  %v1084_v59 = vand.u32 65535, %v3847_v6  ;;  %v3850_v14 = vld [vmem:[#allocation40_spill] sm:$0xff] }
  0xec   : > { %3838 = vst [vmem:[#allocation19_spill] sm:$0xff] %v3084_v29  ;;  %vm880_vm6 = vcmp.eq.f32.partialorder %v3840_v39, %v3084_v29  ;;  %v919_v29 = vand.u32 65535, %v3843_v5 }
  0xed   : > { %v881_v31 = vsel %vm880_vm6, %v876_v51, -inf  ;;  %v3103_v51 = vsel %vm602_vm0, %v584_v52, 2147483648 }
  0xee   : > { %882 = vmax.xlane.f32.xlu1 %v881_v31  ;;  %3845 = vst [vmem:[#allocation28_spill] sm:$0xff] %v3103_v51  ;;  %v3846_v31 = vld [vmem:[#allocation39_spill] sm:$0xff]  ;;  %v1295_v8 = vshra.s32 %v3103_v51, 16 }
  0xef   : > { %v3092_v33 = vpop.xlane.xlu0 %893 }
  0xf0   : > { %3842 = vst [vmem:[#allocation23_spill] sm:$0xff] %v3092_v33  ;;  %vm895_vm8 = vcmp.eq.f32.partialorder %v2682_v48, %v3092_v33  ;;  %v536_v48 = vsel %vm408_vm9, %v2259_v11, %v472_v44  ;;  %v3116_v33 = vpop.xlane.xlu1 %1418  ;;  %v1086_v11 = vcvt.s32.f32 %v1084_v59 }
  0xf1   : > { %v896_v39 = vsel %vm895_vm8, %v891_v53, -inf  ;;  %v921_v53 = vcvt.s32.f32 %v919_v29  ;;  %v601_v52 = vor.u32 %v2382_v9, %v536_v48  ;;  %3849 = vst [vmem:[#allocation32_spill] sm:$0xff] %v3116_v33  ;;  %v3851_v29 = vld [vmem:[#allocation42_spill] sm:$0xff] }
  0xf2   : > { %897 = vmax.xlane.f32.xlu1 %v896_v39  ;;  %v3113_v39 = vsel %vm602_vm0, %v585_v34, 2147483648 }
  0xf3   : > { %v3100_v58 = vpop.xlane.xlu0 %908  ;;  %3848 = vst [vmem:[#allocation26_spill] sm:$0xff] %v3113_v39  ;;  %v3127_v34 = vsel %vm602_vm0, %v601_v52, 2147483648 }
  0xf4   : > { %vm910_vm10 = vcmp.eq.f32.partialorder %v3846_v31, %v3100_v58  ;;  %v3121_v31 = vcvt.s32.f32 %v1295_v8  ;;  %3854 = vst [vmem:[#allocation39_spill] sm:$0xff] %v3127_v34  ;;  %v3132_v59 = vpop.xlane.xlu1 %1208 }
  0xf5   : > { %v911_v36 = vsel %vm910_vm10, %v906_v61, -inf  ;;  %v1114_v61 = vand.u32 65535, %v3851_v29  ;;  %3856 = vst [vmem:[#allocation37_spill] sm:$0xff] %v3132_v59 }
  0xf6   : > { %912 = vmax.xlane.f32.xlu1 %v911_v36  ;;  %3852 = vst [vmem:[#allocation33_spill] sm:$0xff] %v3121_v31  ;;  %v1310_v36 = vshra.s32 %v3113_v39, 16  ;;  %v3860_v39 = vld [vmem:[#allocation48_spill] sm:$0xff] }
  0xf7   : > { %v3110_v5 = vpop.xlane.xlu0 %923  ;;  %v1116_v48 = vcvt.s32.f32 %v1114_v61 }
  0xf8   : > { %vm925_vm11 = vcmp.eq.f32.partialorder %v3850_v14, %v3110_v5  ;;  %v3855_v14 = vld [vmem:[#allocation45_spill] sm:$0xff]  ;;  %v3135_v8 = vcvt.s32.f32 %v1310_v36 }
  0xf9   : > { %v926_v44 = vsel %vm925_vm11, %v921_v53, -inf  ;;  %v1339_v53 = vand.u32 65535, %v3855_v14  ;;  %v1354_v14 = vand.u32 65535, %v3860_v39  ;;  %v3867_v39 = vld [vmem:[#allocation5_spill] sm:$0xff] }
  0xfa   : > { %927 = vmax.xlane.f32.xlu1 %v926_v44  ;;  %3857 = vst [vmem:[#allocation40_spill] sm:$0xff] %v3135_v8  ;;  %v1550_v44 = vshra.s32 %v3127_v34, 16  ;;  %v3864_v34 = vld [vmem:[#allocation50_spill] sm:$0xff]  ;;  %vm1105_vm14 = vcmp.eq.f32.partialorder %v3867_v39, %v3030_v27 }
  0xfb   : > { %v3124_v6 = vpop.xlane.xlu0 %1088 }
  0xfc   : > { %3853 = vst [vmem:[#allocation34_spill] sm:$0xff] %v3124_v6  ;;  %vm1090_vm12 = vcmp.eq.f32.partialorder %v2758_v1, %v3124_v6  ;;  %v1341_v1 = vcvt.s32.f32 %v1339_v53  ;;  %v3865_v6 = vld [vmem:[#allocation4_spill] sm:$0xff] }
  0xfd   : > { %v1091_v9 = vsel %vm1090_vm12, %v1086_v11, -inf  ;;  %v3859_v11 = vld [vmem:[#allocation3_spill] sm:$0xff] }
  0xfe   : > { %1298 = vmax.xlane.f32.xlu1 %v3121_v31  ;;  %1092 = vmax.xlane.f32.xlu0 %v1091_v9  ;;  %v1099_v61 = vand.u32 65535, %v3859_v11  ;;  %v3145_v31 = vcvt.s32.f32 %v1550_v44  ;;  %v3149_v9 = vpop.xlane.xlu1 %998  ;;  %v3866_v11 = vld [vmem:[#allocation52_spill] sm:$0xff] }
  0xff   : > { %v3138_v29 = vpop.xlane.xlu0 %1118  ;;  %3863 = vst [vmem:[#allocation48_spill] sm:$0xff] %v3149_v9  ;;  %v1369_v51 = vand.u32 65535, %v3866_v11 }
 0x100   : > { %3858 = vst [vmem:[#allocation42_spill] sm:$0xff] %v3138_v29  ;;  %vm1120_vm0 = vcmp.eq.f32.partialorder %v2767_v20, %v3138_v29  ;;  %3861 = vst [vmem:[#allocation45_spill] sm:$0xff] %v3145_v31  ;;  %v1324_v20 = vand.u32 65535, %v3865_v6  ;;  %v1101_v53 = vcvt.s32.f32 %v1099_v61  ;;  %v1356_v29 = vcvt.s32.f32 %v1354_v14  ;;  %v3869_v14 = vld [vmem:[#allocation55_spill] sm:$0xff] }
 0x101   : > { %v1121_v52 = vsel %vm1120_vm0, %v1116_v48, -inf  ;;  %v1371_v61 = vcvt.s32.f32 %v1369_v51 }
 0x102   : > { %1313 = vmax.xlane.f32.xlu1 %v3135_v8  ;;  %1122 = vmax.xlane.f32.xlu0 %v1121_v52  ;;  %v1326_v52 = vcvt.s32.f32 %v1324_v20  ;;  %v1106_v6 = vsel %vm1105_vm14, %v1101_v53, -inf  ;;  %v1159_v8 = vand.u32 65535, %v3869_v14  ;;  %v3164_v11 = vpop.xlane.xlu1 %1448  ;;  %v3872_v53 = vld [vmem:[#allocation9_spill] sm:$0xff] }
 0x103   : > { %v3147_v36 = vpop.xlane.xlu0 %1343  ;;  %3870 = vst [vmem:[#allocation50_spill] sm:$0xff] %v3164_v11 }
 0x104   : > { %3862 = vst [vmem:[#allocation3_spill] sm:$0xff] %v3147_v36  ;;  %vm1345_vm13 = vcmp.eq.f32.partialorder %v3864_v34, %v3147_v36  ;;  %v3868_v34 = vld [vmem:[#allocation7_spill] sm:$0xff]  ;;  %v1161_v51 = vcvt.s32.f32 %v1159_v8 }
 0x105   : > { %v1346_v48 = vsel %vm1345_vm13, %v1341_v1, -inf  ;;  %v1129_v36 = vand.u32 65535, %v3868_v34  ;;  %v1144_v34 = vand.u32 65535, %v3872_v53  ;;  %v1189_v53 = vand.u32 65535, %v2861_v57 }
 0x106   : > { %1553 = vmax.xlane.f32.xlu1 %v3145_v31  ;;  %1347 = vmax.xlane.f32.xlu0 %v1346_v48  ;;  %v3871_v48 = vld [vmem:[#allocation6_spill] sm:$0xff]  ;;  %v949_v31 = vand.u32 65535, %v2832_v23  ;;  %v3178_v14 = vpop.xlane.xlu1 %1238  ;;  %v1399_v23 = vand.u32 65535, %v2849_v22 }
 0x107   : > { %v3158_v44 = vpop.xlane.xlu0 %1358  ;;  %vm1330_vm1 = vcmp.eq.f32.partialorder %v3871_v48, %v3038_v10  ;;  %v1146_v8 = vcvt.s32.f32 %v1144_v34 }
 0x108   : > { %vm1360_vm15 = vcmp.eq.f32.partialorder %v2806_v54, %v3158_v44  ;;  %v1131_v54 = vcvt.s32.f32 %v1129_v36  ;;  %v1331_v20 = vsel %vm1330_vm1, %v1326_v52, -inf  ;;  %v1401_v22 = vcvt.s32.f32 %v1399_v23 }
 0x109   : > { %v1361_v1 = vsel %vm1360_vm15, %v1356_v29, -inf }
 0x10a   : > { %1107 = vmax.xlane.f32.xlu1 %v1106_v6  ;;  %1362 = vmax.xlane.f32.xlu0 %v1361_v1  ;;  %v3873_v6 = vld [vmem:[#allocation8_spill] sm:$0xff] }
 0x10b   : > { %v3168_v39 = vpop.xlane.xlu0 %1373  ;;  %vm1135_vm3 = vcmp.eq.f32.partialorder %v3873_v6, %v3047_v26  ;;  %v3192_v6 = vpop.xlane.xlu1 %1028 }
 0x10c   : > { %vm1375_vm2 = vcmp.eq.f32.partialorder %v2826_v19, %v3168_v39  ;;  %v951_v19 = vcvt.s32.f32 %v949_v31  ;;  %v1136_v36 = vsel %vm1135_vm3, %v1131_v54, -inf  ;;  %3878 = vst [vmem:[#allocation52_spill] sm:$0xff] %v3192_v6 }
 0x10d   : > { %v1376_v29 = vsel %vm1375_vm2, %v1371_v61, -inf  ;;  %v3874_v61 = vld [vmem:[#allocation11_spill] sm:$0xff] }
 0x10e   : > { %1332 = vmax.xlane.f32.xlu1 %v1331_v20  ;;  %1377 = vmax.xlane.f32.xlu0 %v1376_v29  ;;  %v934_v48 = vand.u32 65535, %v3874_v61  ;;  %v3875_v20 = vld [vmem:[#allocation12_spill] sm:$0xff]  ;;  %v3881_v61 = vld [vmem:[#allocation21_spill] sm:$0xff] }
 0x10f   : > { %v3176_v1 = vpop.xlane.xlu0 %1163  ;;  %vm1150_vm5 = vcmp.eq.f32.partialorder %v3875_v20, %v3057_v2  ;;  %v1174_v57 = vand.u32 65535, %v3881_v61  ;;  %v979_v20 = vand.u32 65535, %v2870_v12  ;;  %v1429_v12 = vand.u32 65535, %v2879_v55  ;;  %v3885_v61 = vld [vmem:[#allocation61_spill] sm:$0xff]  ;;  %v3889_v55 = vld [vmem:[#allocation62_spill] sm:$0xff] }
 0x110   : > { %vm1165_vm4 = vcmp.eq.f32.partialorder %v2843_v63, %v3176_v1  ;;  %v1151_v63 = vsel %vm1150_vm5, %v1146_v8, -inf  ;;  %v936_v54 = vcvt.s32.f32 %v934_v48  ;;  %v1191_v8 = vcvt.s32.f32 %v1189_v53  ;;  %v3882_v48 = vld [vmem:[#allocation20_spill] sm:$0xff] }
 0x111   : > { %v1166_v52 = vsel %vm1165_vm4, %v1161_v51, -inf  ;;  %v3877_v51 = vld [vmem:[#allocation18_spill] sm:$0xff]  ;;  %vm1390_vm9 = vcmp.eq.f32.partialorder %v3882_v48, %v3077_v4  ;;  %v981_v53 = vcvt.s32.f32 %v979_v20  ;;  %v3890_v20 = vld [vmem:[#allocation27_spill] sm:$0xff] }
 0x112   : > { %1137 = vmax.xlane.f32.xlu1 %v1136_v36  ;;  %1167 = vmax.xlane.f32.xlu0 %v1166_v52  ;;  %v1384_v34 = vand.u32 65535, %v3877_v51  ;;  %v3879_v36 = vld [vmem:[#allocation14_spill] sm:$0xff]  ;;  %v3884_v51 = vld [vmem:[#allocation25_spill] sm:$0xff]  ;;  %vm970_vm0 = vcmp.eq.f32.partialorder %v3890_v20, %v3098_v21  ;;  %v3896_v20 = vld [vmem:[#allocation36_spill] sm:$0xff] }
 0x113   : > { %v3186_v29 = vpop.xlane.xlu0 %953  ;;  %vm940_vm7 = vcmp.eq.f32.partialorder %v3879_v36, %v3066_v47  ;;  %v964_v36 = vand.u32 65535, %v3884_v51  ;;  %v1219_v51 = vand.u32 65535, %v2888_v50  ;;  %v1009_v50 = vand.u32 65535, %v2897_v41 }
 0x114   : > { %3876 = vst [vmem:[#allocation4_spill] sm:$0xff] %v3186_v29  ;;  %vm955_vm6 = vcmp.eq.f32.partialorder %v2856_v24, %v3186_v29  ;;  %v941_v24 = vsel %vm940_vm7, %v936_v54, -inf  ;;  %v1176_v54 = vcvt.s32.f32 %v1174_v57  ;;  %v1459_v41 = vand.u32 65535, %v2906_v32  ;;  %v3901_v32 = vld [vmem:[#allocation65_spill] sm:$0xff] }
 0x115   : > { %v956_v31 = vsel %vm955_vm6, %v951_v19, -inf  ;;  %v1386_v19 = vcvt.s32.f32 %v1384_v34  ;;  %v3886_v34 = vld [vmem:[#allocation22_spill] sm:$0xff] }
 0x116   : > { %1152 = vmax.xlane.f32.xlu1 %v1151_v63  ;;  %957 = vmax.xlane.f32.xlu0 %v956_v31  ;;  %v3206_v31 = vpop.xlane.xlu1 %1478  ;;  %vm1180_vm11 = vcmp.eq.f32.partialorder %v3886_v34, %v3086_v30 }
 0x117   : > { %v3196_v52 = vpop.xlane.xlu0 %1403 }
 0x118   : > { %3880 = vst [vmem:[#allocation5_spill] sm:$0xff] %v3196_v52  ;;  %vm1405_vm8 = vcmp.eq.f32.partialorder %v2866_v56, %v3196_v52  ;;  %v1391_v56 = vsel %vm1390_vm9, %v1386_v19, -inf  ;;  %v1181_v52 = vsel %vm1180_vm11, %v1176_v54, -inf  ;;  %v966_v19 = vcvt.s32.f32 %v964_v36 }
 0x119   : > { %v1406_v23 = vsel %vm1405_vm8, %v1401_v22, -inf }
 0x11a   : > { %942 = vmax.xlane.f32.xlu1 %v941_v24  ;;  %1407 = vmax.xlane.f32.xlu0 %v1406_v23  ;;  %v3888_v23 = vld [vmem:[#allocation29_spill] sm:$0xff]  ;;  %v3220_v57 = vpop.xlane.xlu1 %1268  ;;  %v971_v54 = vsel %vm970_vm0, %v966_v19, -inf }
 0x11b   : > { %v3204_v63 = vpop.xlane.xlu0 %1193  ;;  %v1414_v48 = vand.u32 65535, %v3888_v23  ;;  %v3893_v23 = vld [vmem:[#allocation63_spill] sm:$0xff] }
 0x11c   : > { %3883 = vst [vmem:[#allocation7_spill] sm:$0xff] %v3204_v63  ;;  %vm1195_vm10 = vcmp.eq.f32.partialorder %v3885_v61, %v3204_v63 }
 0x11d   : > { %v1196_v22 = vsel %vm1195_vm10, %v1191_v8, -inf  ;;  %v1431_v8 = vcvt.s32.f32 %v1429_v12  ;;  %v1416_v36 = vcvt.s32.f32 %v1414_v48  ;;  %v1221_v12 = vcvt.s32.f32 %v1219_v51 }
 0x11e   : > { %1392 = vmax.xlane.f32.xlu1 %v1391_v56  ;;  %1197 = vmax.xlane.f32.xlu0 %v1196_v22  ;;  %v3892_v22 = vld [vmem:[#allocation31_spill] sm:$0xff]  ;;  %v1011_v51 = vcvt.s32.f32 %v1009_v50  ;;  %v1461_v50 = vcvt.s32.f32 %v1459_v41  ;;  %v1039_v41 = vand.u32 65535, %v2924_v49  ;;  %v645_v49 = vcvt.f32.s32 %v2952_v13 }
 0x11f   : > { %v3214_v24 = vpop.xlane.xlu0 %983  ;;  %v1204_v34 = vand.u32 65535, %v3892_v22  ;;  %v994_v22 = vand.u32 65535, %v3896_v20  ;;  %v1249_v20 = vand.u32 65535, %v2915_v15 }
 0x120   : > { %3887 = vst [vmem:[#allocation55_spill] sm:$0xff] %v3214_v24  ;;  %vm985_vm12 = vcmp.eq.f32.partialorder %v3889_v55, %v3214_v24  ;;  %v3897_v24 = vld [vmem:[#allocation64_spill] sm:$0xff] }
 0x121   : > { %v986_v61 = vsel %vm985_vm12, %v981_v53, -inf  ;;  %v1206_v48 = vcvt.s32.f32 %v1204_v34  ;;  %v996_v34 = vcvt.s32.f32 %v994_v22 }
 0x122   : > { %1182 = vmax.xlane.f32.xlu1 %v1181_v52  ;;  %987 = vmax.xlane.f32.xlu0 %v986_v61  ;;  %v3894_v52 = vld [vmem:[#allocation30_spill] sm:$0xff]  ;;  %v3234_v61 = vpop.xlane.xlu1 %1058 }
 0x123   : > { %v3224_v56 = vpop.xlane.xlu0 %1433  ;;  %vm1420_vm14 = vcmp.eq.f32.partialorder %v3894_v52, %v3116_v33 }
 0x124   : > { %3891 = vst [vmem:[#allocation6_spill] sm:$0xff] %v3224_v56  ;;  %vm1435_vm13 = vcmp.eq.f32.partialorder %v3893_v23, %v3224_v56  ;;  %v1421_v19 = vsel %vm1420_vm14, %v1416_v36, -inf  ;;  %v3898_v23 = vld [vmem:[#allocation35_spill] sm:$0xff]  ;;  %vm1707_vm14 = vcmask 195712  }
 0x125   : > { %v1436_v53 = vsel %vm1435_vm13, %v1431_v8, -inf  ;;  %vm1210_vm1 = vcmp.eq.f32.partialorder %v3898_v23, %v3132_v59  ;;  %v3904_v23 = vld [vmem:[#allocation47_spill] sm:$0xff]  ;;  %vm1700_vm13 = vcmask 130112  }
 0x126   : > { %972 = vmax.xlane.f32.xlu1 %v971_v54  ;;  %1437 = vmax.xlane.f32.xlu0 %v1436_v53  ;;  %v3900_v53 = vld [vmem:[#allocation41_spill] sm:$0xff]  ;;  %v1211_v56 = vsel %vm1210_vm1, %v1206_v48, -inf  ;;  %v3248_v36 = vpop.xlane.xlu1 %1508  ;;  %v3905_v59 = vld [vmem:[#allocation51_spill] sm:$0xff] }
 0x127   : > { %v3232_v55 = vpop.xlane.xlu0 %1223  ;;  %v1444_v52 = vand.u32 65535, %v3900_v53  ;;  %v1024_v53 = vand.u32 65535, %v3904_v23  ;;  %v1474_v15 = vand.u32 65535, %v3905_v59  ;;  %v3911_v59 = vld [vmem:[#allocation68_spill] sm:$0xff] }
 0x128   : > { %3895 = vst [vmem:[#allocation9_spill] sm:$0xff] %v3232_v55  ;;  %vm1225_vm15 = vcmp.eq.f32.partialorder %v3897_v24, %v3232_v55  ;;  %v3906_v55 = vld [vmem:[#allocation54_spill] sm:$0xff]  ;;  %v630_v21 = vcvt.f32.s32 %v3911_v59  ;;  %v3915_v59 = vld [vmem:[#allocation67_spill] sm:$0xff] }
 0x129   : > { %v1226_v8 = vsel %vm1225_vm15, %v1221_v12, -inf  ;;  %v3902_v12 = vld [vmem:[#allocation43_spill] sm:$0xff]  ;;  %v1264_v33 = vand.u32 65535, %v3906_v55  ;;  %v1446_v23 = vcvt.s32.f32 %v1444_v52  ;;  %v615_v55 = vcvt.f32.s32 %v2935_v3  ;;  %v3916_v3 = vld [vmem:[#allocation46_spill] sm:$0xff] }
 0x12a   : > { %1422 = vmax.xlane.f32.xlu1 %v1421_v19  ;;  %1227 = vmax.xlane.f32.xlu0 %v1226_v8  ;;  %v1234_v19 = vand.u32 65535, %v3902_v12  ;;  %v3903_v8 = vld [vmem:[#allocation38_spill] sm:$0xff]  ;;  %vm1240_vm7 = vcmp.eq.f32.partialorder %v3916_v3, %v3178_v14  ;;  %vm1714_vm15 = vcmask 261312  }
 0x12b   : > { %v3242_v54 = vpop.xlane.xlu0 %1013  ;;  %vm1000_vm3 = vcmp.eq.f32.partialorder %v3903_v8, %v3149_v9  ;;  %v1251_v9 = vcvt.s32.f32 %v1249_v20  ;;  %v3284_v52 = vshll.u32 %v615_v55, 16 }
 0x12c   : > { %3899 = vst [vmem:[#allocation8_spill] sm:$0xff] %v3242_v54  ;;  %vm1015_vm2 = vcmp.eq.f32.partialorder %v3901_v32, %v3242_v54  ;;  %v3907_v32 = vld [vmem:[#allocation57_spill] sm:$0xff]  ;;  %v3909_v54 = vld [vmem:[#allocation59_spill] sm:$0xff]  ;;  %v1001_v12 = vsel %vm1000_vm3, %v996_v34, -inf  ;;  %v1041_v34 = vcvt.s32.f32 %v1039_v41  ;;  %vm1728_vm3 = vcmask 392512  }
 0x12d   : > { %v1016_v24 = vsel %vm1015_vm2, %v1011_v51, -inf  ;;  %v1054_v48 = vand.u32 65535, %v3907_v32  ;;  %v1504_v22 = vand.u32 65535, %v3909_v54  ;;  %v1279_v32 = vand.u32 65535, %v2955_v37  ;;  %v3912_v54 = vld [vmem:[#allocation44_spill] sm:$0xff] }
 0x12e   : > { %1212 = vmax.xlane.f32.xlu1 %v1211_v56  ;;  %1017 = vmax.xlane.f32.xlu0 %v1016_v24  ;;  %v1489_v56 = vand.u32 65535, %v2938_v0  ;;  %v3910_v24 = vld [vmem:[#allocation66_spill] sm:$0xff]  ;;  %vm1450_vm5 = vcmp.eq.f32.partialorder %v3912_v54, %v3164_v11  ;;  %v660_v0 = vcvt.f32.s32 %v2965_v62  ;;  %v3913_v37 = vlaneseq }
 0x12f   : > { %v3257_v51 = vpop.xlane.xlu0 %1463  ;;  %v1451_v13 = vsel %vm1450_vm5, %v1446_v23, -inf  ;;  %v1236_v54 = vcvt.s32.f32 %v1234_v19  ;;  %v631_v11 = vshll.u32 %v630_v21, 16  ;;  %v1476_v23 = vcvt.s32.f32 %v1474_v15  ;;  %v3917_v21 = vld [vmem:[#allocation69_spill] sm:$0xff] }
 0x130   : > { %3908 = vst [vmem:[#allocation11_spill] sm:$0xff] %v3257_v51  ;;  %vm1465_vm4 = vcmp.eq.f32.partialorder %v3910_v24, %v3257_v51  ;;  %v3279_v24 = vshrl.u32 %v3913_v37, 7  ;;  %v675_v51 = vcvt.f32.s32 %v2975_v46  ;;  %v646_v37 = vshll.u32 %v645_v49, 16  ;;  %v3918_v15 = vld [vmem:[#allocation49_spill] sm:$0xff] }
 0x131   : > { %v1466_v8 = vsel %vm1465_vm4, %v1461_v50, -inf  ;;  %v661_v63 = vshll.u32 %v660_v0, 16  ;;  %v3296_v19 = vcvt.s32.f32 %v1264_v33  ;;  %v3298_v46 = vcvt.s32.f32 %v1054_v48 }
 0x132   : > { %1002 = vmax.xlane.f32.xlu1 %v1001_v12  ;;  %1467 = vmax.xlane.f32.xlu0 %v1466_v8  ;;  %v3914_v12 = vld [vmem:[#allocation2_spill] sm:$0xff]  ;;  %v1241_v41 = vsel %vm1240_vm7, %v1236_v54, -inf  ;;  %v1491_v3 = vcvt.s32.f32 %v1489_v56  ;;  %v3300_v49 = vcvt.s32.f32 %v1504_v22  ;;  %v676_v0 = vshll.u32 %v675_v51, 16 }
 0x133   : > { %v3273_v20 = vpop.xlane.xlu1 %627  ;;  %v3275_v50 = vpop.xlane.xlu0 %1253  ;;  %v1695_v8 = vadd.s32 4294967288, %v3914_v12  ;;  %vm1030_vm9 = vcmp.eq.f32.partialorder %v3918_v15, %v3192_v6  ;;  %v720_v33 = vcvt.f32.s32 %v3012_v28  ;;  %v735_v48 = vcvt.f32.s32 %v3020_v35 }
 0x134   : > { %vm1255_vm6 = vcmp.eq.f32.partialorder %v3915_v59, %v3275_v50  ;;  %v1026_v59 = vcvt.s32.f32 %v1024_v53  ;;  %v705_v53 = vcvt.f32.s32 %v3000_v16  ;;  %v1709_v56 = vadd.s32 4294967272, %v3914_v12 }
 0x135   : > { %v1256_v62 = vsel %vm1255_vm6, %v1251_v9, -inf  ;;  %v3292_v9 = vsub.s32 %v1695_v8, %v3279_v24  ;;  %v1702_v8 = vadd.s32 4294967280, %v3914_v12  ;;  %v1716_v16 = vadd.s32 4294967264, %v3914_v12 }
 0x136   : > { %1452 = vmax.xlane.f32.xlu1 %v1451_v13  ;;  %1257 = vmax.xlane.f32.xlu0 %v1256_v62  ;;  %v690_v13 = vcvt.f32.s32 %v2988_v42  ;;  %v629_v42 = vcvt.f32.s32 %v3273_v20  ;;  %v1281_v51 = vcvt.s32.f32 %v1279_v32  ;;  %v1031_v28 = vsel %vm1030_vm9, %v1026_v59, -inf }
 0x137   : > { %v643_v30 = vpop.xlane.xlu1 %642  ;;  %v3289_v29 = vpop.xlane.xlu0 %1043  ;;  %v1723_v15 = vadd.s32 4294967256, %v3914_v12  ;;  %v3319_v20 = vshll.u32 %v720_v33, 16  ;;  %v3321_v6 = vshll.u32 %v735_v48, 16  ;;  %vm1721_vm2 = vcmask 326912  }
 0x138   : > { %vm1045_vm8 = vcmp.eq.f32.partialorder %v3917_v21, %v3289_v29  ;;  %v644_v62 = vcvt.f32.s32 %v643_v30  ;;  %v691_v35 = vshll.u32 %v690_v13, 16  ;;  %v3327_v30 = vsub.s32 %v1709_v56, %v3279_v24 }
 0x139   : > { %v1046_v55 = vsel %vm1045_vm8, %v1041_v34, -inf  ;;  %v3332_v13 = vsub.s32 %v1716_v16, %v3279_v24  ;;  %v750_v56 = vcvt.f32.s32 %v3026_v25  ;;  %v3349_v16 = vsub.s32 %v3914_v12, %v3279_v24 }
 0x13a   : > { %1242 = vmax.xlane.f32.xlu1 %v1241_v41  ;;  %1047 = vmax.xlane.f32.xlu0 %v1046_v55  ;;  %v706_v41 = vshll.u32 %v705_v53, 16  ;;  %v3919_v55 = vld [vmem:[#allocation53_spill] sm:$0xff]  ;;  %v647_v33 = vadd.s32 %v646_v37, %v644_v62  ;;  %vm1735_vm4 = vcmask 458112   ;;  %vm1742_vm9 = vcmask 523712  }
 0x13b   : > { %v658_v22 = vpop.xlane.xlu1 %657  ;;  %v3310_v34 = vpop.xlane.xlu0 %1493  ;;  %vm1480_vm11 = vcmp.eq.f32.partialorder %v3919_v55, %v3206_v31 }
 0x13c   : > { %vm1495_vm10 = vcmp.eq.f32.partialorder %v2962_v18, %v3310_v34  ;;  %v659_v54 = vcvt.f32.s32 %v658_v22  ;;  %v3324_v18 = vsub.s32 %v1702_v8, %v3279_v24  ;;  %v1481_v8 = vsel %vm1480_vm11, %v1476_v23, -inf }
 0x13d   : > { %v1496_v21 = vsel %vm1495_vm10, %v1491_v3, -inf  ;;  %v632_v3 = vadd.s32 %v631_v11, %v629_v42  ;;  %v3343_v11 = vsub.s32 %v1723_v15, %v3279_v24  ;;  %v3921_v42 = vand.u32 65535, %v2978_v40 }
 0x13e   : > { %1032 = vmax.xlane.f32.xlu1 %v1031_v28  ;;  %1497 = vmax.xlane.f32.xlu0 %v1496_v21  ;;  %v662_v48 = vadd.s32 %v661_v63, %v659_v54  ;;  %v3920_v28 = vld [vmem:[#allocation56_spill] sm:$0xff]  ;;  %v1565_v55 = vand.u32 65535, %v647_v33  ;;  %vm1749_vm10 = vcmask 589312   ;;  %vm1756_vm11 = vcmask 654912  }
 0x13f   : > { %v673_v32 = vpop.xlane.xlu1 %672  ;;  %v3329_v59 = vpop.xlane.xlu0 %1283  ;;  %vm1270_vm0 = vcmp.eq.f32.partialorder %v3920_v28, %v3220_v57  ;;  %v1564_v62 = vand.u32 65535, %v632_v3 }
 0x140   : > { %v674_v53 = vcvt.f32.s32 %v673_v32  ;;  %vm1285_vm12 = vcmp.eq.f32.partialorder %v2973_v60, %v3329_v59  ;;  %v1071_v60 = vcvt.s32.f32 %v3921_v42  ;;  %v1566_v15 = vand.u32 65535, %v662_v48 }
 0x141   : > { %v1286_v22 = vsel %vm1285_vm12, %v1281_v51, -inf  ;;  %v1730_v51 = vadd.s32 4294967248, %v3914_v12  ;;  %v1271_v40 = vsel %vm1270_vm0, %v3296_v19, -inf  ;;  %v1737_v19 = vadd.s32 4294967240, %v3914_v12 }
 0x142   : > { %1482 = vmax.xlane.f32.xlu1 %v1481_v8  ;;  %1287 = vmax.xlane.f32.xlu0 %v1286_v22  ;;  %v677_v37 = vadd.s32 %v676_v0, %v674_v53  ;;  %v3922_v0 = vand.u32 65535, %v2991_v43  ;;  %v3923_v53 = vld [vmem:[#allocation58_spill] sm:$0xff]  ;;  %v1628_v43 = vsub.s32 28, %v1564_v62  ;;  %vm1763_vm12 = vcmask 720512  }
 0x143   : > { %v688_v63 = vpop.xlane.xlu1 %687  ;;  %v613_v23 = vpop.xlane.xlu0 %612  ;;  %vm1060_vm1 = vcmp.eq.f32.partialorder %v3923_v53, %v3234_v61  ;;  %v3362_v33 = vsub.s32 %v1730_v51, %v3279_v24  ;;  %vm1770_vm0 = vcmask 786112  }
 0x144   : > { %v689_v54 = vcvt.f32.s32 %v688_v63  ;;  %v614_v21 = vcvt.f32.s32 %v613_v23  ;;  %v1521_v32 = vcvt.s32.f32 %v3922_v0  ;;  %v1567_v22 = vand.u32 65535, %v677_v37  ;;  %v3924_v37 = vld [vmem:[#allocation60_spill] sm:$0xff] }
 0x145   : > { %vm1510_vm6 = vcmp.eq.f32.partialorder %v3924_v37, %v3248_v36 }
 0x146   : > { %v692_v8 = vadd.s32 %v691_v35, %v689_v54  ;;  %v617_v3 = vadd.s32 %v3284_v52, %v614_v21  ;;  %1272 = vmax.xlane.f32.xlu1 %v1271_v40  ;;  %v1629_v35 = vsub.s32 28, %v1565_v55  ;;  %v1630_v54 = vsub.s32 28, %v1566_v15 }
 0x147   : > { %v703_v48 = vpop.xlane.xlu1 %702  ;;  %v3364_v42 = vpop.xlane.xlu0 %1073  ;;  %v1061_v52 = vsel %vm1060_vm1, %v3298_v46, -inf  ;;  %v1631_v40 = vsub.s32 28, %v1567_v22  ;;  %v3376_v55 = vsub.s32 %v1737_v19, %v3279_v24  ;;  %v1699_v46 = vrot.slane %v1628_v43, %v3292_v9 }
 0x148   : > { %v1568_v28 = vand.u32 65535, %v692_v8  ;;  %v1563_v63 = vand.u32 65535, %v617_v3  ;;  %v704_v23 = vcvt.f32.s32 %v703_v48  ;;  %vm1075_vm5 = vcmp.eq.f32.partialorder %v2997_v38, %v3364_v42 }
 0x149   : > { %v1076_v62 = vsel %vm1075_vm5, %v1071_v60, -inf  ;;  %v3925_v8 = vand.u32 65535, %v3003_v45  ;;  %v1706_v60 = vrot.slane %v1629_v35, %v3324_v18  ;;  %v1713_v22 = vrot.slane %v1630_v54, %v3327_v30 }
 0x14a   : > { %v1627_v51 = vsub.s32 28, %v1563_v63  ;;  %v707_v21 = vadd.s32 %v706_v41, %v704_v23  ;;  %1062 = vmax.xlane.f32.xlu1 %v1061_v52  ;;  %v1632_v0 = vsub.s32 28, %v1568_v28  ;;  %1077 = vmax.xlane.f32.xlu0 %v1076_v62  ;;  %v1511_v19 = vsel %vm1510_vm6, %v3300_v49, -inf }
 0x14b   : > { %v718_v15 = vpop.xlane.xlu1 %717  ;;  %v3378_v38 = vpop.xlane.xlu0 %1523  ;;  %v1536_v53 = vcvt.s32.f32 %v3925_v8  ;;  %v1720_v23 = vrot.slane %v1631_v40, %v3332_v13  ;;  %vm1777_vm1 = vcmask 851712   ;;  %vm1784_vm5 = vcmask 917312  }
 0x14c   : > { %v1694_v3 = vrot.slane %v1627_v51, %v3349_v16  ;;  %v1569_v48 = vand.u32 65535, %v707_v21  ;;  %v719_v41 = vcvt.f32.s32 %v718_v15  ;;  %vm1525_vm7 = vcmp.eq.f32.partialorder %v3009_v7, %v3378_v38 }
 0x14d   : > { %v1526_v63 = vsel %vm1525_vm7, %v1521_v32, -inf  ;;  %v1727_v35 = vrot.slane %v1632_v0, %v3343_v11  ;;  %v1744_v7 = vadd.s32 4294967232, %v3914_v12  ;;  %v751_v32 = vshll.u32 %v750_v56, 16 }
 0x14e   : > { %v1701_v45 = vsel %vm1700_vm13, %v1699_v46, %v1694_v3  ;;  %v1633_v28 = vsub.s32 28, %v1569_v48  ;;  %v722_v43 = vadd.s32 %v3319_v20, %v719_v41  ;;  %1512 = vmax.xlane.f32.xlu1 %v1511_v19  ;;  %1527 = vmax.xlane.f32.xlu0 %v1526_v63  ;;  %v3926_v46 = vld [vmem:[#allocation70_spill] sm:$0xff]  ;;  %v1758_v63 = vadd.s32 4294967216, %v3914_v12 }
 0x14f   : > { %v1708_v54 = vsel %vm1707_vm14, %v1706_v60, %v1701_v45  ;;  %v733_v52 = vpop.xlane.xlu1 %732  ;;  %v3398_v51 = vpop.xlane.xlu0 %1538  ;;  %v765_v3 = vcvt.f32.s32 %v3926_v46  ;;  %v3412_v41 = vsub.s32 %v1744_v7, %v3279_v24  ;;  %v1765_v46 = vadd.s32 4294967208, %v3914_v12 }
 0x150   : > { %v1715_v49 = vsel %vm1714_vm15, %v1713_v22, %v1708_v54  ;;  %v1734_v37 = vrot.slane %v1633_v28, %v3362_v33  ;;  %v1570_v21 = vand.u32 65535, %v722_v43  ;;  %v734_v20 = vcvt.f32.s32 %v733_v52  ;;  %v3927_v28 = vld [vmem:[#allocation71_spill] sm:$0xff] }
 0x151   : > { %v1722_v62 = vsel %vm1721_vm2, %v1720_v23, %v1715_v49  ;;  %vm1540_vm8 = vcmp.eq.f32.partialorder %v3018_v17, %v3398_v51  ;;  %v1751_v17 = vadd.s32 4294967224, %v3914_v12  ;;  %v766_v45 = vshll.u32 %v765_v3, 16 }
 0x152   : > { %v1729_v40 = vsel %vm1728_vm3, %v1727_v35, %v1722_v62  ;;  %v1634_v0 = vsub.s32 28, %v1570_v21  ;;  %v737_v15 = vadd.s32 %v3321_v6, %v734_v20  ;;  %v1541_v8 = vsel %vm1540_vm8, %v1536_v53, -inf }
 0x153   : > { %v1736_v48 = vsel %vm1735_vm4, %v1734_v37, %v1729_v40  ;;  %1542 = vmax.xlane.f32.xlu0 %v1541_v8  ;;  %v748_v25 = vpop.xlane.xlu1 %747  ;;  %v780_v43 = vcvt.f32.s32 %v3927_v28  ;;  %v3421_v54 = vsub.s32 %v1751_v17, %v3279_v24  ;;  %v3426_v40 = vsub.s32 %v1758_v63, %v3279_v24  ;;  %v3929_v17 = vld [vmem:[#allocation73_spill] sm:$0xff] }
 0x154   : > { %v1741_v56 = vrot.slane %v1634_v0, %v3376_v55  ;;  %v1571_v60 = vand.u32 65535, %v737_v15  ;;  %v749_v22 = vcvt.f32.s32 %v748_v25  ;;  %vm1791_vm6 = vcmask 982912  }
 0x155   : > { %v781_v20 = vshll.u32 %v780_v43, 16  ;;  %vm3750_vm7 = vcmask 1048512  }
 0x156   : > { %v1743_v19 = vsel %vm1742_vm9, %v1741_v56, %v1736_v48  ;;  %v1635_v6 = vsub.s32 28, %v1571_v60  ;;  %v752_v53 = vadd.s32 %v751_v32, %v749_v22  ;;  %v3928_v32 = vld [vmem:[#allocation72_spill] sm:$0xff]  ;;  %v810_v22 = vcvt.f32.s32 %v3929_v17 }
 0x157   : > { %v763_v23 = vpop.xlane.xlu1 %762  ;;  %v795_v62 = vcvt.f32.s32 %v3928_v32 }
 0x158   : > { %v1748_v35 = vrot.slane %v1635_v6, %v3412_v41  ;;  %v1572_v7 = vand.u32 65535, %v752_v53  ;;  %v764_v52 = vcvt.f32.s32 %v763_v23 }
 0x159   : > { %v796_v60 = vshll.u32 %v795_v62, 16  ;;  %v1779_v62 = vadd.s32 4294967192, %v3914_v12 }
 0x15a   : > { %v1750_v49 = vsel %vm1749_vm10, %v1748_v35, %v1743_v19  ;;  %v1636_v37 = vsub.s32 28, %v1572_v7  ;;  %v767_v21 = vadd.s32 %v766_v45, %v764_v52  ;;  %v1772_v19 = vadd.s32 4294967200, %v3914_v12  ;;  %v3930_v52 = vld [vmem:[#allocation13_spill] sm:$0xff] }
 0x15b   : > { %v778_v0 = vpop.xlane.xlu1 %777  ;;  %v3435_v45 = vsub.s32 %v1765_v46, %v3279_v24  ;;  %v811_v7 = vshll.u32 %v810_v22, 16  ;;  %v3449_v22 = vsub.s32 %v1779_v62, %v3279_v24 }
 0x15c   : > { %v1755_v15 = vrot.slane %v1636_v37, %v3421_v54  ;;  %v1573_v8 = vand.u32 65535, %v767_v21  ;;  %v779_v3 = vcvt.f32.s32 %v778_v0  ;;  %v3440_v37 = vsub.s32 %v1772_v19, %v3279_v24 }
 0x15e   : > { %v1757_v48 = vsel %vm1756_vm11, %v1755_v15, %v1750_v49  ;;  %v1637_v25 = vsub.s32 28, %v1573_v8  ;;  %v782_v56 = vadd.s32 %v781_v20, %v779_v3  ;;  %v825_v49 = vcvt.f32.s32 %v3930_v52 }
 0x15f   : > { %v793_v6 = vpop.xlane.xlu1 %792 }
 0x160   : > { %v1762_v53 = vrot.slane %v1637_v25, %v3426_v40  ;;  %v1574_v28 = vand.u32 65535, %v782_v56  ;;  %v794_v43 = vcvt.f32.s32 %v793_v6  ;;  %v826_v3 = vshll.u32 %v825_v49, 16 }
 0x161   : > { %v1786_v56 = vadd.s32 4294967184, %v3914_v12 }
 0x162   : > { %v1764_v63 = vsel %vm1763_vm12, %v1762_v53, %v1757_v48  ;;  %v1638_v23 = vsub.s32 28, %v1574_v28  ;;  %v797_v35 = vadd.s32 %v796_v60, %v794_v43  ;;  %v3931_v48 = vld [vmem:[#allocation10_spill] sm:$0xff] }
 0x163   : > { %v808_v21 = vpop.xlane.xlu1 %807  ;;  %v840_v25 = vcvt.f32.s32 %v3931_v48 }
 0x164   : > { %v1769_v20 = vrot.slane %v1638_v23, %v3435_v45  ;;  %v1575_v32 = vand.u32 65535, %v797_v35  ;;  %v809_v0 = vcvt.f32.s32 %v808_v21  ;;  %v3932_v23 = vld [vmem:[#allocation15_spill] sm:$0xff] }
 0x165   : > { %v855_v35 = vcvt.f32.s32 %v3932_v23 }
 0x166   : > { %v1771_v15 = vsel %vm1770_vm0, %v1769_v20, %v1764_v63  ;;  %v1639_v8 = vsub.s32 28, %v1575_v32  ;;  %v812_v46 = vadd.s32 %v811_v7, %v809_v0  ;;  %v841_v63 = vshll.u32 %v840_v25, 16 }
 0x167   : > { %v823_v60 = vpop.xlane.xlu1 %822  ;;  %v3454_v7 = vsub.s32 %v1786_v56, %v3279_v24  ;;  %v1793_v20 = vadd.s32 4294967176, %v3914_v12 }
 0x168   : > { %v1776_v17 = vrot.slane %v1639_v8, %v3440_v37  ;;  %v1576_v19 = vand.u32 65535, %v812_v46  ;;  %v824_v6 = vcvt.f32.s32 %v823_v60  ;;  %v856_v8 = vshll.u32 %v855_v35, 16  ;;  %v3933_v46 = vld [vmem:[#allocation16_spill] sm:$0xff] }
 0x169   : > { %v3462_v56 = vsub.s32 %v1793_v20, %v3279_v24 }
 0x16a   : > { %v1778_v53 = vsel %vm1777_vm1, %v1776_v17, %v1771_v15  ;;  %v1640_v28 = vsub.s32 28, %v1576_v19  ;;  %v827_v43 = vadd.s32 %v826_v3, %v824_v6  ;;  %v870_v3 = vcvt.f32.s32 %v3933_v46 }
 0x16b   : > { %v838_v52 = vpop.xlane.xlu1 %837 }
 0x16c   : > { %v1783_v49 = vrot.slane %v1640_v28, %v3449_v22  ;;  %v1577_v21 = vand.u32 65535, %v827_v43  ;;  %v839_v32 = vcvt.f32.s32 %v838_v52  ;;  %v871_v28 = vshll.u32 %v870_v3, 16  ;;  %v3934_v43 = vld [vmem:[#allocation19_spill] sm:$0xff] }
 0x16e   : > { %v1785_v62 = vsel %vm1784_vm5, %v1783_v49, %v1778_v53  ;;  %v1641_v0 = vsub.s32 28, %v1577_v21  ;;  %v842_v15 = vadd.s32 %v841_v63, %v839_v32  ;;  %v885_v63 = vcvt.f32.s32 %v3934_v43  ;;  %v3935_v21 = vld [vmem:[#allocation23_spill] sm:$0xff] }
 0x16f   : > { %v853_v48 = vpop.xlane.xlu1 %852  ;;  %v900_v20 = vcvt.f32.s32 %v3935_v21 }
 0x170   : > { %v1790_v25 = vrot.slane %v1641_v0, %v3454_v7  ;;  %v1578_v60 = vand.u32 65535, %v842_v15  ;;  %v854_v17 = vcvt.f32.s32 %v853_v48  ;;  %v886_v0 = vshll.u32 %v885_v63, 16 }
 0x171   : > { %v901_v48 = vshll.u32 %v900_v20, 16 }
 0x172   : > { %v1792_v19 = vsel %vm1791_vm6, %v1790_v25, %v1785_v62  ;;  %v1642_v12 = vsub.s32 28, %v1578_v60  ;;  %v857_v6 = vadd.s32 %v856_v8, %v854_v17  ;;  %v915_v25 = vcvt.f32.s32 %v3100_v58  ;;  %v3936_v58 = vld [vmem:[#allocation28_spill] sm:$0xff] }
 0x173   : > { %v868_v53 = vpop.xlane.xlu1 %867  ;;  %v1294_v20 = vand.u32 65535, %v3936_v58 }
 0x174   : > { %v1797_v23 = vrot.slane %v1642_v12, %v3462_v56  ;;  %v1579_v35 = vand.u32 65535, %v857_v6  ;;  %v869_v52 = vcvt.f32.s32 %v868_v53  ;;  %v916_v63 = vshll.u32 %v915_v25, 16  ;;  %v3937_v25 = vld [vmem:[#allocation34_spill] sm:$0xff] }
 0x176   : > { %v3468_v49 = vsel %vm3750_vm7, %v1797_v23, %v1792_v19  ;;  %v872_v24 = vadd.s32 %v871_v28, %v869_v52  ;;  %v1643_v62 = vsub.s32 28, %v1579_v35  ;;  %v930_v35 = vcvt.f32.s32 %v3110_v5 }
 0x177   : > { %v883_v32 = vpop.xlane.xlu1 %882 }
 0x178   : > { %v1580_v15 = vand.u32 65535, %v872_v24  ;;  %v884_v8 = vcvt.f32.s32 %v883_v32  ;;  %v1803_v17 = vrot.slane %v1643_v62, %v3349_v16 }
 0x17a   : > { %v1644_v46 = vsub.s32 28, %v1580_v15  ;;  %v887_v3 = vadd.s32 %v886_v0, %v884_v8  ;;  %v931_v8 = vshll.u32 %v930_v35, 16 }
 0x17b   : > { %v898_v60 = vpop.xlane.xlu1 %897 }
 0x17c   : > { %v1807_v12 = vrot.slane %v1644_v46, %v3292_v9  ;;  %v1581_v19 = vand.u32 65535, %v887_v3  ;;  %v899_v6 = vcvt.f32.s32 %v898_v60  ;;  %v1095_v60 = vcvt.f32.s32 %v3937_v25 }
 0x17e   : > { %v1808_v28 = vsel %vm1700_vm13, %v1807_v12, %v1803_v17  ;;  %v1645_v53 = vsub.s32 28, %v1581_v19  ;;  %v902_v43 = vadd.s32 %v901_v48, %v899_v6  ;;  %v3938_v17 = vld [vmem:[#allocation26_spill] sm:$0xff]  ;;  %v1296_v12 = vcvt.s32.f32 %v1294_v20 }
 0x17f   : > { %v913_v23 = vpop.xlane.xlu1 %912  ;;  %v1309_v5 = vand.u32 65535, %v3938_v17  ;;  %v3942_v17 = vld [vmem:[#allocation40_spill] sm:$0xff] }
 0x180   : > { %v1812_v52 = vrot.slane %v1645_v53, %v3324_v18  ;;  %v1582_v24 = vand.u32 65535, %v902_v43  ;;  %v914_v21 = vcvt.f32.s32 %v913_v23  ;;  %v3939_v23 = vld [vmem:[#allocation39_spill] sm:$0xff] }
 0x182   : > { %v1813_v32 = vsel %vm1707_vm14, %v1812_v52, %v1808_v28  ;;  %v1646_v0 = vsub.s32 28, %v1582_v24  ;;  %v917_v62 = vadd.s32 %v916_v63, %v914_v21  ;;  %v1549_v63 = vand.u32 65535, %v3939_v23  ;;  %v3940_v24 = vld [vmem:[#allocation33_spill] sm:$0xff] }
 0x183   : > { %v928_v15 = vpop.xlane.xlu1 %927  ;;  %v1096_v21 = vshll.u32 %v1095_v60, 16 }
 0x184   : > { %v1817_v46 = vrot.slane %v1646_v0, %v3327_v30  ;;  %v1583_v3 = vand.u32 65535, %v917_v62  ;;  %v929_v48 = vcvt.f32.s32 %v928_v15  ;;  %v1311_v62 = vcvt.s32.f32 %v1309_v5  ;;  %v3941_v15 = vld [vmem:[#allocation42_spill] sm:$0xff] }
 0x185   : > { %v1551_v5 = vcvt.s32.f32 %v1549_v63 }
 0x186   : > { %v1818_v19 = vsel %vm1714_vm15, %v1817_v46, %v1813_v32  ;;  %v1647_v6 = vsub.s32 28, %v1583_v3  ;;  %v932_v53 = vadd.s32 %v931_v8, %v929_v48  ;;  %v1125_v8 = vcvt.f32.s32 %v3941_v15 }
 0x187   : > { %v3483_v43 = vpop.xlane.xlu1 %1298  ;;  %v1093_v28 = vpop.xlane.xlu0 %1092  ;;  %v1155_v15 = vcvt.f32.s32 %v3057_v2 }
 0x188   : > { %v1822_v35 = vrot.slane %v1647_v6, %v3332_v13  ;;  %v1584_v52 = vand.u32 65535, %v932_v53  ;;  %vm1300_vm8 = vcmp.eq.f32.partialorder %v3940_v24, %v3483_v43  ;;  %v1094_v58 = vcvt.f32.s32 %v1093_v28  ;;  %v3943_v6 = vld [vmem:[#allocation3_spill] sm:$0xff] }
 0x189   : > { %v1301_v0 = vsel %vm1300_vm8, %v1296_v12, -inf  ;;  %v1350_v60 = vcvt.f32.s32 %v3943_v6  ;;  %v1126_v23 = vshll.u32 %v1125_v8, 16  ;;  %v1365_v24 = vcvt.f32.s32 %v3158_v44 }
 0x18a   : > { %v1823_v20 = vsel %vm1721_vm2, %v1822_v35, %v1818_v19  ;;  %v1648_v32 = vsub.s32 28, %v1584_v52  ;;  %1302 = vmax.xlane.f32.xlu1 %v1301_v0  ;;  %v1097_v46 = vadd.s32 %v1096_v21, %v1094_v58  ;;  %v1110_v19 = vcvt.f32.s32 %v3030_v27  ;;  %v3945_v21 = vld [vmem:[#allocation45_spill] sm:$0xff] }
 0x18b   : > { %v3491_v3 = vpop.xlane.xlu1 %1313  ;;  %v1123_v48 = vpop.xlane.xlu0 %1122  ;;  %v1351_v0 = vshll.u32 %v1350_v60, 16  ;;  %v1335_v27 = vcvt.f32.s32 %v3038_v10  ;;  %v1170_v10 = vcvt.f32.s32 %v3176_v1  ;;  %v1156_v2 = vshll.u32 %v1155_v15, 16 }
 0x18c   : > { %v1827_v25 = vrot.slane %v1648_v32, %v3343_v11  ;;  %vm1315_vm7 = vcmp.eq.f32.partialorder %v3942_v17, %v3491_v3  ;;  %v1124_v53 = vcvt.f32.s32 %v1123_v48  ;;  %v1111_v63 = vshll.u32 %v1110_v19, 16 }
 0x18d   : > { %v1316_v12 = vsel %vm1315_vm7, %v1311_v62, -inf  ;;  %v1366_v17 = vshll.u32 %v1365_v24, 16  ;;  %v1595_v44 = vand.u32 65535, %v1097_v46  ;;  %v1336_v19 = vshll.u32 %v1335_v27, 16 }
 0x18e   : > { %v3499_v28 = vsel %vm1728_vm3, %v1827_v25, %v1823_v20  ;;  %1317 = vmax.xlane.f32.xlu1 %v1316_v12  ;;  %v1127_v32 = vadd.s32 %v1126_v23, %v1124_v53  ;;  %v1140_v20 = vcvt.f32.s32 %v3047_v26 }
 0x18f   : > { %v3501_v35 = vpop.xlane.xlu1 %1553  ;;  %v1348_v52 = vpop.xlane.xlu0 %1347 }
 0x190   : > { %3944 = vst [vmem:[#allocation12_spill] sm:$0xff] %v3501_v35  ;;  %vm1555_vm8 = vcmp.eq.f32.partialorder %v3945_v21, %v3501_v35  ;;  %v1349_v58 = vcvt.f32.s32 %v1348_v52  ;;  %v1380_v52 = vcvt.f32.s32 %v3168_v39  ;;  %v1597_v60 = vand.u32 65535, %v1127_v32 }
 0x191   : > { %v1556_v62 = vsel %vm1555_vm8, %v1551_v5, -inf  ;;  %v1141_v23 = vshll.u32 %v1140_v20, 16  ;;  %v945_v39 = vcvt.f32.s32 %v3066_v47  ;;  %v1395_v32 = vcvt.f32.s32 %v3077_v4 }
 0x192   : > { %1557 = vmax.xlane.f32.xlu1 %v1556_v62  ;;  %v1352_v8 = vadd.s32 %v1351_v0, %v1349_v58  ;;  %v1659_v58 = vsub.s32 28, %v1595_v44  ;;  %v1381_v24 = vshll.u32 %v1380_v52, 16  ;;  %v1661_v46 = vsub.s32 28, %v1597_v60 }
 0x193   : > { %v1108_v48 = vpop.xlane.xlu1 %1107  ;;  %v1363_v25 = vpop.xlane.xlu0 %1362  ;;  %v1171_v20 = vshll.u32 %v1170_v10, 16 }
 0x194   : > { %v1109_v6 = vcvt.f32.s32 %v1108_v48  ;;  %v1364_v12 = vcvt.f32.s32 %v1363_v25  ;;  %v1612_v21 = vand.u32 65535, %v1352_v8  ;;  %v1882_v44 = vrot.slane %v1659_v58, %v3349_v16 }
 0x196   : > { %v1112_v53 = vadd.s32 %v1111_v63, %v1109_v6  ;;  %v1367_v5 = vadd.s32 %v1366_v17, %v1364_v12  ;;  %v3946_v17 = vld [vmem:[#allocation4_spill] sm:$0xff]  ;;  %v1676_v8 = vsub.s32 28, %v1612_v21 }
 0x197   : > { %v1333_v26 = vpop.xlane.xlu1 %1332  ;;  %v1378_v62 = vpop.xlane.xlu0 %1377  ;;  %v960_v1 = vcvt.f32.s32 %v3946_v17 }
 0x198   : > { %v1596_v0 = vand.u32 65535, %v1112_v53  ;;  %v1334_v35 = vcvt.f32.s32 %v1333_v26  ;;  %v1613_v48 = vand.u32 65535, %v1367_v5  ;;  %v1379_v25 = vcvt.f32.s32 %v1378_v62  ;;  %v3947_v62 = vld [vmem:[#allocation5_spill] sm:$0xff] }
 0x199   : > { %v1891_v5 = vrot.slane %v1661_v46, %v3324_v18 }
 0x19a   : > { %v1660_v63 = vsub.s32 28, %v1596_v0  ;;  %v1337_v27 = vadd.s32 %v1336_v19, %v1334_v35  ;;  %v1382_v6 = vadd.s32 %v1381_v24, %v1379_v25  ;;  %v1677_v47 = vsub.s32 28, %v1613_v48 }
 0x19b   : > { %v1138_v12 = vpop.xlane.xlu1 %1137  ;;  %v1168_v15 = vpop.xlane.xlu0 %1167  ;;  %v1410_v35 = vcvt.f32.s32 %v3947_v62  ;;  %v1965_v0 = vrot.slane %v1676_v8, %v3292_v9  ;;  %v961_v62 = vshll.u32 %v960_v1, 16 }
 0x19c   : > { %v1886_v52 = vrot.slane %v1660_v63, %v3292_v9  ;;  %v1611_v60 = vand.u32 65535, %v1337_v27  ;;  %v1139_v53 = vcvt.f32.s32 %v1138_v12  ;;  %v1614_v26 = vand.u32 65535, %v1382_v6  ;;  %v3948_v12 = vld [vmem:[#allocation17_spill] sm:$0xff] }
 0x19d   : > { %v1169_v4 = vcvt.f32.s32 %v1168_v15  ;;  %v1185_v15 = vcvt.f32.s32 %v3948_v12 }
 0x19e   : > { %v1887_v19 = vsel %vm1700_vm13, %v1886_v52, %v1882_v44  ;;  %v1675_v10 = vsub.s32 28, %v1611_v60  ;;  %v1142_v21 = vadd.s32 %v1141_v23, %v1139_v53  ;;  %v1678_v24 = vsub.s32 28, %v1614_v26 }
 0x19f   : > { %v1892_v58 = vsel %vm1707_vm14, %v1891_v5, %v1887_v19  ;;  %v1172_v25 = vadd.s32 %v1171_v20, %v1169_v4  ;;  %v1153_v63 = vpop.xlane.xlu1 %1152  ;;  %v958_v27 = vpop.xlane.xlu0 %957  ;;  %v1970_v44 = vrot.slane %v1677_v47, %v3324_v18  ;;  %v3949_v20 = vld [vmem:[#allocation7_spill] sm:$0xff]  ;;  %v946_v19 = vshll.u32 %v945_v39, 16 }
 0x1a0   : > { %v1961_v17 = vrot.slane %v1675_v10, %v3349_v16  ;;  %v1598_v46 = vand.u32 65535, %v1142_v21  ;;  %v1154_v48 = vcvt.f32.s32 %v1153_v63  ;;  %v959_v6 = vcvt.f32.s32 %v958_v27 }
 0x1a1   : > { %v1600_v52 = vand.u32 65535, %v1172_v25  ;;  %v1975_v9 = vrot.slane %v1678_v24, %v3327_v30  ;;  %v1200_v53 = vcvt.f32.s32 %v3949_v20  ;;  %v1411_v10 = vshll.u32 %v1410_v35, 16  ;;  %v3951_v35 = vld [vmem:[#allocation55_spill] sm:$0xff] }
 0x1a2   : > { %v1966_v23 = vsel %vm1700_vm13, %v1965_v0, %v1961_v17  ;;  %v1662_v8 = vsub.s32 28, %v1598_v46  ;;  %v1157_v60 = vadd.s32 %v1156_v2, %v1154_v48  ;;  %v962_v16 = vadd.s32 %v961_v62, %v959_v6  ;;  %v3950_v2 = vld [vmem:[#allocation24_spill] sm:$0xff] }
 0x1a3   : > { %v1971_v5 = vsel %vm1707_vm14, %v1970_v44, %v1966_v23  ;;  %v943_v26 = vpop.xlane.xlu1 %942  ;;  %v1408_v4 = vpop.xlane.xlu0 %1407  ;;  %v1664_v47 = vsub.s32 28, %v1600_v52  ;;  %v1396_v24 = vshll.u32 %v1395_v32, 16  ;;  %v1186_v63 = vshll.u32 %v1185_v15, 16 }
 0x1a4   : > { %v1976_v1 = vsel %vm1714_vm15, %v1975_v9, %v1971_v5  ;;  %v1599_v21 = vand.u32 65535, %v1157_v60  ;;  %v1896_v18 = vrot.slane %v1662_v8, %v3327_v30  ;;  %v944_v0 = vcvt.f32.s32 %v943_v26  ;;  %v3952_v60 = vld [vmem:[#allocation32_spill] sm:$0xff]  ;;  %v3953_v26 = vld [vmem:[#allocation6_spill] sm:$0xff] }
 0x1a5   : > { %v1409_v25 = vcvt.f32.s32 %v1408_v4  ;;  %v975_v27 = vcvt.f32.s32 %v3950_v2  ;;  %v1201_v46 = vshll.u32 %v1200_v53, 16  ;;  %v1586_v48 = vand.u32 65535, %v962_v16 }
 0x1a6   : > { %v1663_v17 = vsub.s32 28, %v1599_v21  ;;  %v947_v6 = vadd.s32 %v946_v19, %v944_v0  ;;  %v990_v44 = vcvt.f32.s32 %v3951_v35  ;;  %v1897_v52 = vsel %vm1714_vm15, %v1896_v18, %v1892_v58 }
 0x1a7   : > { %v1412_v12 = vadd.s32 %v1411_v10, %v1409_v25  ;;  %v1393_v62 = vpop.xlane.xlu1 %1392  ;;  %v1198_v39 = vpop.xlane.xlu0 %1197  ;;  %v1906_v32 = vrot.slane %v1664_v47, %v3343_v11  ;;  %v1425_v20 = vcvt.f32.s32 %v3952_v60  ;;  %v1440_v4 = vcvt.f32.s32 %v3953_v26  ;;  %v3956_v26 = vld [vmem:[#allocation48_spill] sm:$0xff] }
 0x1a8   : > { %v1901_v23 = vrot.slane %v1663_v17, %v3332_v13  ;;  %v1394_v9 = vcvt.f32.s32 %v1393_v62  ;;  %v1199_v30 = vcvt.f32.s32 %v1198_v39  ;;  %v1585_v15 = vand.u32 65535, %v947_v6 }
 0x1a9   : > { %v1616_v8 = vand.u32 65535, %v1412_v12  ;;  %v1650_v19 = vsub.s32 28, %v1586_v48  ;;  %v991_v17 = vshll.u32 %v990_v44, 16  ;;  %v976_v62 = vshll.u32 %v975_v27, 16 }
 0x1aa   : > { %v1902_v53 = vsel %vm1721_vm2, %v1901_v23, %v1897_v52  ;;  %v1397_v5 = vadd.s32 %v1396_v24, %v1394_v9  ;;  %v1202_v16 = vadd.s32 %v1201_v46, %v1199_v30  ;;  %v1649_v10 = vsub.s32 28, %v1585_v15 }
 0x1ab   : > { %v1183_v21 = vpop.xlane.xlu1 %1182  ;;  %v1907_v0 = vsel %vm1728_vm3, %v1906_v32, %v1902_v53  ;;  %v988_v25 = vpop.xlane.xlu0 %987  ;;  %v1680_v2 = vsub.s32 28, %v1616_v8  ;;  %v1426_v39 = vshll.u32 %v1425_v20, 16  ;;  %v1441_v35 = vshll.u32 %v1440_v4, 16  ;;  %v3954_v32 = vld [vmem:[#allocation9_spill] sm:$0xff] }
 0x1ac   : > { %v1615_v58 = vand.u32 65535, %v1397_v5  ;;  %v1184_v18 = vcvt.f32.s32 %v1183_v21  ;;  %v989_v47 = vcvt.f32.s32 %v988_v25  ;;  %v1832_v6 = vrot.slane %v1649_v10, %v3362_v33  ;;  %v3955_v5 = vld [vmem:[#allocation37_spill] sm:$0xff] }
 0x1ad   : > { %v1602_v12 = vand.u32 65535, %v1202_v16  ;;  %v1837_v48 = vrot.slane %v1650_v19, %v3376_v55  ;;  %v1230_v15 = vcvt.f32.s32 %v3954_v32  ;;  %v1985_v44 = vrot.slane %v1680_v2, %v3343_v11 }
 0x1ae   : > { %v1679_v24 = vsub.s32 28, %v1615_v58  ;;  %v1187_v46 = vadd.s32 %v1186_v63, %v1184_v18  ;;  %v1833_v23 = vsel %vm1735_vm4, %v1832_v6, %v3499_v28  ;;  %v992_v9 = vadd.s32 %v991_v17, %v989_v47  ;;  %v3957_v6 = vld [vmem:[#allocation8_spill] sm:$0xff] }
 0x1af   : > { %v973_v30 = vpop.xlane.xlu1 %972  ;;  %v1438_v52 = vpop.xlane.xlu0 %1437  ;;  %v1666_v27 = vsub.s32 28, %v1602_v12  ;;  %v1838_v63 = vsel %vm1742_vm9, %v1837_v48, %v1833_v23  ;;  %v1215_v16 = vcvt.f32.s32 %v3955_v5  ;;  %v1005_v4 = vcvt.f32.s32 %v3956_v26 }
 0x1b0   : > { %v1980_v8 = vrot.slane %v1679_v24, %v3332_v13  ;;  %v1601_v60 = vand.u32 65535, %v1187_v46  ;;  %v974_v20 = vcvt.f32.s32 %v973_v30  ;;  %v1439_v53 = vcvt.f32.s32 %v1438_v52 }
 0x1b1   : > { %v1588_v10 = vand.u32 65535, %v992_v9  ;;  %v1231_v2 = vshll.u32 %v1230_v15, 16  ;;  %v1020_v12 = vcvt.f32.s32 %v3957_v6  ;;  %v1916_v24 = vrot.slane %v1666_v27, %v3376_v55  ;;  %v3958_v9 = vld [vmem:[#allocation11_spill] sm:$0xff] }
 0x1b2   : > { %v1981_v28 = vsel %vm1721_vm2, %v1980_v8, %v1976_v1  ;;  %v1665_v19 = vsub.s32 28, %v1601_v60  ;;  %v977_v21 = vadd.s32 %v976_v62, %v974_v20  ;;  %v1442_v25 = vadd.s32 %v1441_v35, %v1439_v53 }
 0x1b3   : > { %v1423_v58 = vpop.xlane.xlu1 %1422  ;;  %v1986_v11 = vsel %vm1728_vm3, %v1985_v44, %v1981_v28  ;;  %v1228_v13 = vpop.xlane.xlu0 %1227  ;;  %v1216_v1 = vshll.u32 %v1215_v16, 16  ;;  %v1470_v30 = vcvt.f32.s32 %v3958_v9  ;;  %v1652_v52 = vsub.s32 28, %v1588_v10 }
 0x1b4   : > { %v1911_v18 = vrot.slane %v1665_v19, %v3362_v33  ;;  %v1424_v47 = vcvt.f32.s32 %v1423_v58  ;;  %v1229_v17 = vcvt.f32.s32 %v1228_v13  ;;  %v1587_v46 = vand.u32 65535, %v977_v21 }
 0x1b5   : > { %v1618_v48 = vand.u32 65535, %v1442_v25  ;;  %v1006_v27 = vshll.u32 %v1005_v4, 16  ;;  %v1021_v26 = vshll.u32 %v1020_v12, 16  ;;  %v1245_v19 = vcvt.f32.s32 %v3178_v14 }
 0x1b6   : > { %v1912_v23 = vsel %vm1735_vm4, %v1911_v18, %v1907_v0  ;;  %v1427_v62 = vadd.s32 %v1426_v39, %v1424_v47  ;;  %v1232_v35 = vadd.s32 %v1231_v2, %v1229_v17  ;;  %v1651_v32 = vsub.s32 28, %v1587_v46  ;;  %v3959_v0 = vld [vmem:[#allocation50_spill] sm:$0xff] }
 0x1b7   : > { %v1213_v15 = vpop.xlane.xlu1 %1212  ;;  %v1917_v44 = vsel %vm1742_vm9, %v1916_v24, %v1912_v23  ;;  %v1018_v8 = vpop.xlane.xlu0 %1017  ;;  %v1682_v60 = vsub.s32 28, %v1618_v48  ;;  %v1455_v39 = vcvt.f32.s32 %v3959_v0  ;;  %v1471_v25 = vshll.u32 %v1470_v30, 16 }
 0x1b8   : > { %v1617_v20 = vand.u32 65535, %v1427_v62  ;;  %v1214_v53 = vcvt.f32.s32 %v1213_v15  ;;  %v1019_v5 = vcvt.f32.s32 %v1018_v8  ;;  %v1842_v16 = vrot.slane %v1651_v32, %v3412_v41 }
 0x1b9   : > { %v1604_v28 = vand.u32 65535, %v1232_v35  ;;  %v1847_v58 = vrot.slane %v1652_v52, %v3421_v54  ;;  %v1260_v4 = vcvt.f32.s32 %v3275_v50  ;;  %v1995_v17 = vrot.slane %v1682_v60, %v3376_v55 }
 0x1ba   : > { %v1681_v21 = vsub.s32 28, %v1617_v20  ;;  %v1217_v10 = vadd.s32 %v1216_v1, %v1214_v53  ;;  %v1843_v13 = vsel %vm1749_vm10, %v1842_v16, %v1838_v63  ;;  %v1022_v2 = vadd.s32 %v1021_v26, %v1019_v5 }
 0x1bb   : > { %v1003_v18 = vpop.xlane.xlu1 %1002  ;;  %v1468_v47 = vpop.xlane.xlu0 %1467  ;;  %v1668_v24 = vsub.s32 28, %v1604_v28  ;;  %v1848_v14 = vsel %vm1756_vm11, %v1847_v58, %v1843_v13  ;;  %v1456_v1 = vshll.u32 %v1455_v39, 16  ;;  %v1246_v23 = vshll.u32 %v1245_v19, 16 }
 0x1bc   : > { %v1990_v6 = vrot.slane %v1681_v21, %v3362_v33  ;;  %v1603_v12 = vand.u32 65535, %v1217_v10  ;;  %v1004_v46 = vcvt.f32.s32 %v1003_v18  ;;  %v1469_v48 = vcvt.f32.s32 %v1468_v47 }
 0x1bd   : > { %v1590_v35 = vand.u32 65535, %v1022_v2  ;;  %v1261_v32 = vshll.u32 %v1260_v4, 16  ;;  %v1050_v60 = vcvt.f32.s32 %v3289_v29  ;;  %v1926_v20 = vrot.slane %v1668_v24, %v3421_v54 }
 0x1be   : > { %v1991_v62 = vsel %vm1735_vm4, %v1990_v6, %v1986_v11  ;;  %v1667_v63 = vsub.s32 28, %v1603_v12  ;;  %v1007_v9 = vadd.s32 %v1006_v27, %v1004_v46  ;;  %v1472_v30 = vadd.s32 %v1471_v25, %v1469_v48  ;;  %v3960_v11 = vld [vmem:[#allocation52_spill] sm:$0xff] }
 0x1bf   : > { %v1453_v52 = vpop.xlane.xlu1 %1452  ;;  %v1996_v50 = vsel %vm1742_vm9, %v1995_v17, %v1991_v62  ;;  %v1258_v55 = vpop.xlane.xlu0 %1257  ;;  %v1035_v26 = vcvt.f32.s32 %v3960_v11  ;;  %v1500_v0 = vcvt.f32.s32 %v3310_v34  ;;  %v1654_v39 = vsub.s32 28, %v1590_v35 }
 0x1c0   : > { %v1921_v33 = vrot.slane %v1667_v63, %v3412_v41  ;;  %v1454_v15 = vcvt.f32.s32 %v1453_v52  ;;  %v1259_v8 = vcvt.f32.s32 %v1258_v55  ;;  %v1589_v53 = vand.u32 65535, %v1007_v9 }
 0x1c1   : > { %v1620_v5 = vand.u32 65535, %v1472_v30  ;;  %v1051_v18 = vshll.u32 %v1050_v60, 16  ;;  %v1036_v17 = vshll.u32 %v1035_v26, 16  ;;  %v1501_v34 = vshll.u32 %v1500_v0, 16 }
 0x1c2   : > { %v1922_v27 = vsel %vm1749_vm10, %v1921_v33, %v1917_v44  ;;  %v1457_v16 = vadd.s32 %v1456_v1, %v1454_v15  ;;  %v1262_v28 = vadd.s32 %v1261_v32, %v1259_v8  ;;  %v1653_v19 = vsub.s32 28, %v1589_v53 }
 0x1c3   : > { %v1243_v21 = vpop.xlane.xlu1 %1242  ;;  %v1927_v10 = vsel %vm1756_vm11, %v1926_v20, %v1922_v27  ;;  %v1048_v25 = vpop.xlane.xlu0 %1047  ;;  %v1684_v58 = vsub.s32 28, %v1620_v5  ;;  %v1485_v44 = vcvt.f32.s32 %v3206_v31  ;;  %v1857_v24 = vrot.slane %v1654_v39, %v3435_v45 }
 0x1c4   : > { %v1619_v29 = vand.u32 65535, %v1457_v16  ;;  %v1244_v13 = vcvt.f32.s32 %v1243_v21  ;;  %v1049_v2 = vcvt.f32.s32 %v1048_v25  ;;  %v1852_v47 = vrot.slane %v1653_v19, %v3426_v40 }
 0x1c5   : > { %v1606_v4 = vand.u32 65535, %v1262_v28  ;;  %v1290_v63 = vcvt.f32.s32 %v3329_v59  ;;  %v2005_v35 = vrot.slane %v1684_v58, %v3421_v54  ;;  %v1486_v32 = vshll.u32 %v1485_v44, 16 }
 0x1c6   : > { %v1683_v6 = vsub.s32 28, %v1619_v29  ;;  %v1247_v12 = vadd.s32 %v1246_v23, %v1244_v13  ;;  %v1853_v46 = vsel %vm1763_vm12, %v1852_v47, %v1848_v14  ;;  %v1052_v48 = vadd.s32 %v1051_v18, %v1049_v2 }
 0x1c7   : > { %v1033_v1 = vpop.xlane.xlu1 %1032  ;;  %v1498_v62 = vpop.xlane.xlu0 %1497  ;;  %v1670_v52 = vsub.s32 28, %v1606_v4  ;;  %v1858_v31 = vsel %vm1770_vm0, %v1857_v24, %v1853_v46  ;;  %v1275_v33 = vcvt.f32.s32 %v3220_v57  ;;  %v1065_v57 = vcvt.f32.s32 %v3234_v61 }
 0x1c8   : > { %v2000_v9 = vrot.slane %v1683_v6, %v3412_v41  ;;  %v1605_v30 = vand.u32 65535, %v1247_v12  ;;  %v1034_v55 = vcvt.f32.s32 %v1033_v1  ;;  %v1499_v23 = vcvt.f32.s32 %v1498_v62 }
 0x1c9   : > { %v1592_v8 = vand.u32 65535, %v1052_v48  ;;  %v1291_v41 = vshll.u32 %v1290_v63, 16  ;;  %v1936_v27 = vrot.slane %v1670_v52, %v3435_v45  ;;  %v1080_v19 = vcvt.f32.s32 %v3364_v42 }
 0x1ca   : > { %v2001_v14 = vsel %vm1749_vm10, %v2000_v9, %v1996_v50  ;;  %v1669_v15 = vsub.s32 28, %v1605_v30  ;;  %v1037_v60 = vadd.s32 %v1036_v17, %v1034_v55  ;;  %v1502_v20 = vadd.s32 %v1501_v34, %v1499_v23 }
 0x1cb   : > { %v1483_v59 = vpop.xlane.xlu1 %1482  ;;  %v2006_v54 = vsel %vm1756_vm11, %v2005_v35, %v2001_v14  ;;  %v1288_v53 = vpop.xlane.xlu0 %1287  ;;  %v1656_v21 = vsub.s32 28, %v1592_v8  ;;  %v1276_v13 = vshll.u32 %v1275_v33, 16  ;;  %v1066_v44 = vshll.u32 %v1065_v57, 16 }
 0x1cc   : > { %v1931_v5 = vrot.slane %v1669_v15, %v3426_v40  ;;  %v1484_v11 = vcvt.f32.s32 %v1483_v59  ;;  %v1289_v26 = vcvt.f32.s32 %v1288_v53  ;;  %v1591_v16 = vand.u32 65535, %v1037_v60 }
 0x1cd   : > { %v1622_v28 = vand.u32 65535, %v1502_v20  ;;  %v1081_v12 = vshll.u32 %v1080_v19, 16  ;;  %v1867_v42 = vrot.slane %v1656_v21, %v3449_v22  ;;  %v1530_v46 = vcvt.f32.s32 %v3378_v38 }
 0x1ce   : > { %v1932_v50 = vsel %vm1763_vm12, %v1931_v5, %v1927_v10  ;;  %v1487_v0 = vadd.s32 %v1486_v32, %v1484_v11  ;;  %v1292_v39 = vadd.s32 %v1291_v41, %v1289_v26  ;;  %v1655_v25 = vsub.s32 28, %v1591_v16 }
 0x1cf   : > { %v1273_v58 = vpop.xlane.xlu1 %1272  ;;  %v1937_v29 = vsel %vm1770_vm0, %v1936_v27, %v1932_v50  ;;  %v1686_v4 = vsub.s32 28, %v1622_v28  ;;  %v1515_v10 = vcvt.f32.s32 %v3248_v36  ;;  %v1531_v60 = vshll.u32 %v1530_v46, 16  ;;  %v3962_v46 = vld [vmem:[#allocation12_spill] sm:$0xff] }
 0x1d0   : > { %v1621_v2 = vand.u32 65535, %v1487_v0  ;;  %v1274_v18 = vcvt.f32.s32 %v1273_v58  ;;  %v1862_v47 = vrot.slane %v1655_v25, %v3440_v37  ;;  %v1608_v17 = vand.u32 65535, %v1292_v39 }
 0x1d1   : > { %v2015_v35 = vrot.slane %v1686_v4, %v3435_v45  ;;  %v1516_v32 = vshll.u32 %v1515_v10, 16  ;;  %vm2037_vm13 = vcmask 1041409   ;;  %vm3961_vm14 = vcmask 1048512  }
 0x1d2   : > { %v1685_v61 = vsub.s32 28, %v1621_v2  ;;  %v1277_v6 = vadd.s32 %v1276_v13, %v1274_v18  ;;  %v1863_v34 = vsel %vm1777_vm1, %v1862_v47, %v1858_v31  ;;  %v1672_v9 = vsub.s32 28, %v1608_v17  ;;  %vm3963_vm2 = vmmov %vm3961_vm14 }
 0x1d3   : > { %v1063_v24 = vpop.xlane.xlu1 %1062  ;;  %v1078_v63 = vpop.xlane.xlu0 %1077  ;;  %v1868_v30 = vsel %vm1784_vm5, %v1867_v42, %v1863_v34  ;;  %v1305_v10 = vcvt.f32.s32 %v3483_v43  ;;  %vm2039_vm15 = vcmask 1042434   ;;  %vm2041_vm3 = vcmask 1043459   ;;  %vm3964_vm4 = vmmov %vm3963_vm2 }
 0x1d4   : > { %v2010_v48 = vrot.slane %v1685_v61, %v3426_v40  ;;  %v1607_v1 = vand.u32 65535, %v1277_v6  ;;  %v1064_v62 = vcvt.f32.s32 %v1063_v24  ;;  %v1079_v52 = vcvt.f32.s32 %v1078_v63 }
 0x1d5   : > { %v1545_v40 = vcvt.f32.s32 %v3398_v51  ;;  %v1946_v20 = vrot.slane %v1672_v9, %v3449_v22  ;;  %v1306_v42 = vshll.u32 %v1305_v10, 16 }
 0x1d6   : > { %v2011_v36 = vsel %vm1763_vm12, %v2010_v48, %v2006_v54  ;;  %v1671_v55 = vsub.s32 28, %v1607_v1  ;;  %v1067_v23 = vadd.s32 %v1066_v44, %v1064_v62  ;;  %v1082_v31 = vadd.s32 %v1081_v12, %v1079_v52 }
 0x1d7   : > { %v1513_v33 = vpop.xlane.xlu1 %1512  ;;  %v2016_v38 = vsel %vm1770_vm0, %v2015_v35, %v2011_v36  ;;  %v1528_v45 = vpop.xlane.xlu0 %1527  ;;  %v1546_v16 = vshll.u32 %v1545_v40, 16  ;;  %v1560_v48 = vcvt.f32.s32 %v3962_v46 }
 0x1d8   : > { %v1941_v14 = vrot.slane %v1671_v55, %v3440_v37  ;;  %v1593_v15 = vand.u32 65535, %v1067_v23  ;;  %v1514_v8 = vcvt.f32.s32 %v1513_v33  ;;  %v1594_v59 = vand.u32 65535, %v1082_v31 }
 0x1d9   : > { %v1529_v53 = vcvt.f32.s32 %v1528_v45 }
 0x1da   : > { %v1942_v54 = vsel %vm1777_vm1, %v1941_v14, %v1937_v29  ;;  %v1657_v41 = vsub.s32 28, %v1593_v15  ;;  %v1517_v5 = vadd.s32 %v1516_v32, %v1514_v8  ;;  %v1658_v11 = vsub.s32 28, %v1594_v59 }
 0x1db   : > { %v1532_v26 = vadd.s32 %v1531_v60, %v1529_v53  ;;  %v1947_v27 = vsel %vm1784_vm5, %v1946_v20, %v1942_v54 }
 0x1dc   : > { %v1872_v51 = vrot.slane %v1657_v41, %v3454_v7  ;;  %v1623_v28 = vand.u32 65535, %v1517_v5  ;;  %v1543_v57 = vpop.xlane.xlu0 %1542  ;;  %v1877_v50 = vrot.slane %v1658_v11, %v3462_v56 }
 0x1dd   : > { %v1624_v0 = vand.u32 65535, %v1532_v26  ;;  %v1544_v39 = vcvt.f32.s32 %v1543_v57 }
 0x1de   : > { %v1873_v19 = vsel %vm1791_vm6, %v1872_v51, %v1868_v30  ;;  %v1687_v21 = vsub.s32 28, %v1623_v28  ;;  %v1561_v30 = vshll.u32 %v1560_v48, 16 }
 0x1df   : > { %v1878_v25 = vsel %vm3961_vm14, %v1877_v50, %v1873_v19  ;;  %v1688_v58 = vsub.s32 28, %v1624_v0  ;;  %v1547_v29 = vadd.s32 %v1546_v16, %v1544_v39 }
 0x1e0   : > { %v2038_v13 = vsel %vm2037_vm13, %v1878_v25, %v3468_v49  ;;  %v2020_v2 = vrot.slane %v1687_v21, %v3440_v37  ;;  %v1320_v49 = vcvt.f32.s32 %v3491_v3 }
 0x1e1   : > { %v2025_v18 = vrot.slane %v1688_v58, %v3449_v22  ;;  %v1625_v47 = vand.u32 65535, %v1547_v29 }
 0x1e2   : > { %v2021_v4 = vsel %vm1777_vm1, %v2020_v2, %v2016_v38  ;;  %v1321_v22 = vshll.u32 %v1320_v49, 16 }
 0x1e3   : > { %v2026_v17 = vsel %vm1784_vm5, %v2025_v18, %v2021_v4  ;;  %v1689_v44 = vsub.s32 28, %v1625_v47 }
 0x1e5   : > { %v2030_v61 = vrot.slane %v1689_v44, %v3454_v7 }
 0x1e7   : > { %v2031_v6 = vsel %vm1791_vm6, %v2030_v61, %v2026_v17 }
 0x213   : > { %v1303_v12 = vpop.xlane.xlu1 %1302 }
 0x214   : > { %v1304_v34 = vcvt.f32.s32 %v1303_v12 }
 0x216   : > { %v1307_v37 = vadd.s32 %v1306_v42, %v1304_v34 }
 0x217   : > { %v1318_v24 = vpop.xlane.xlu1 %1317 }
 0x218   : > { %v1609_v1 = vand.u32 65535, %v1307_v37  ;;  %v1319_v62 = vcvt.f32.s32 %v1318_v24 }
 0x21a   : > { %v1673_v63 = vsub.s32 28, %v1609_v1  ;;  %v1322_v35 = vadd.s32 %v1321_v22, %v1319_v62 }
 0x21b   : > { %v1558_v9 = vpop.xlane.xlu1 %1557 }
 0x21c   : > { %v1951_v52 = vrot.slane %v1673_v63, %v3454_v7  ;;  %v1610_v43 = vand.u32 65535, %v1322_v35  ;;  %v1559_v36 = vcvt.f32.s32 %v1558_v9 }
 0x21e   : > { %v1952_v55 = vsel %vm1791_vm6, %v1951_v52, %v1947_v27  ;;  %v1674_v3 = vsub.s32 28, %v1610_v43  ;;  %v1562_v23 = vadd.s32 %v1561_v30, %v1559_v36 }
 0x220   : > { %v1956_v32 = vrot.slane %v1674_v3, %v3462_v56  ;;  %v1626_v31 = vand.u32 65535, %v1562_v23 }
 0x222   : > { %v1957_v33 = vsel %vm3963_vm2, %v1956_v32, %v1952_v55  ;;  %v1690_v38 = vsub.s32 28, %v1626_v31 }
 0x223   : > { %v2040_v40 = vsel %vm2039_vm15, %v1957_v33, %v2038_v13 }
 0x224   : > { %v2035_v14 = vrot.slane %v1690_v38, %v3462_v56 }
 0x226   : > { %v2036_v7 = vsel %vm3964_vm4, %v2035_v14, %v2031_v6 }
 0x227   : > { %v2042_v15 = vsel %vm2041_vm3, %v2036_v7, %v2040_v40 }
 0x228   : > { %2043 = vst [vmem:[%s150_s17] sm:$0xf] %v2042_v15 }
 0x229 PF: > { %s11_s8 = sadd.s32 1, %s2337_s8   ;;  %s3965_s6 = smov %s2333_s7 }
 0x22a   : > { %p8_p5 = scmp.ge.s32.totalorder %s11_s8, 4   ;;  %s3966_s7 = smov %s3968_s9 }
 0x22c   :  { %10 = sbr.rel (!%p8_p5) target bundleno = 2 (0x2), region = 54 }

</bundles_post_ra>
